<compile_context>
chip_gen: v6e
topology: v6e:2x2x1
jax: 0.10.0
libtpu: 0.0.40
codegen_flags: <defaults>
</compile_context>

<pallas_src>
import math
from functools import partial

import jax
import jax.numpy as jnp
from jax.experimental import pallas as pl
from jax.experimental.pallas import tpu as pltpu


# ---------------------------------------------------------------------------
# Pure-JAX window partition / reverse (used only by the reference)
# ---------------------------------------------------------------------------
def window_partition(x, window_size):
    B, H, W, C = x.shape
    x = x.reshape(B, H // window_size, window_size, W // window_size, window_size, C)
    return jnp.transpose(x, (0, 1, 3, 2, 4, 5)).reshape(-1, window_size, window_size, C)


def window_reverse(windows, window_size, H, W):
    B = windows.shape[0] // (H * W // window_size // window_size)
    x = windows.reshape(B, H // window_size, W // window_size, window_size, window_size, -1)
    return jnp.transpose(x, (0, 1, 3, 2, 4, 5)).reshape(B, H, W, -1)


# ---------------------------------------------------------------------------
# Pallas kernel: one (1, R*ws, ws, C) block = R stacked windows
#   fused [Q*scale | K | V@Wproj] projection -> per-head attention batched
#   over the R windows -> accumulate directly into the output block.
# ---------------------------------------------------------------------------
def window_attn_kernel(x_ref, w_ref, b_ref, bproj_ref, o_ref, *,
                       num_heads, ws, compute_dtype, approx_recip):
    blk_h = x_ref.shape[1]             # R*ws
    C = x_ref.shape[-1]
    T = blk_h // ws                    # windows in this block
    N_w = ws * ws
    hd = C // num_heads
    w_out = 2 * C + num_heads * C
    cdt = compute_dtype                # matmul input dtype (f32 or bf16)

    # (R*ws, ws, C) -> (T*N_w, C): pure tile-aligned reshape (ws == sublane tile).
    x = x_ref[0].reshape(T * N_w, C).astype(cdt)

    # Fused projection [Q*scale | K | V'] for all T windows at once.  Softmax
    # scale and the per-head output projection (Wproj_h) are folded into the
    # weight/bias ahead of time.  f32 MXU accumulation, biases added in f32.
    qkv = jnp.dot(x, w_ref[...], preferred_element_type=jnp.float32)
    qkv = (qkv + b_ref[...]).astype(cdt)                 # (T*N_w, 2C + nh*C)
    qkv = qkv.reshape(T, N_w, w_out)

    acc = jnp.zeros((T, N_w, C), jnp.float32)
    for h in range(num_heads):                           # static unroll over heads only
        q = qkv[:, :, h * hd:(h + 1) * hd]               # (T, N_w, hd)   scale folded
        k = qkv[:, :, C + h * hd:C + (h + 1) * hd]       # (T, N_w, hd)
        v = qkv[:, :, 2 * C + h * C:2 * C + (h + 1) * C]  # (T, N_w, C)  Wproj folded

        s = jnp.einsum("tqd,tkd->tqk", q, k,
                       preferred_element_type=jnp.float32)          # (T, N_w, N_w)
        # Keep the max-subtraction for numerical safety (review #9: drop only if
        # a bundle dump shows the VPU is the saturating slot).
        s = s - jnp.max(s, axis=-1, keepdims=True)
        p = jnp.exp(s)                                   # TODO(synk): bf16 exp on v6e/v7x
        p = p * pl.reciprocal(jnp.sum(p, axis=-1, keepdims=True), approx=approx_recip)
        # NOTE: torch's masked_fill(isinf|isnan, 0) is a no-op after the
        # max-subtracted softmax for finite inputs, so it is elided here.

        # Output projection already folded into v -> accumulate directly.
        acc = acc + jnp.einsum("tqk,tkd->tqd", p.astype(cdt), v,
                               preferred_element_type=jnp.float32)

    out = (acc + bproj_ref[...]).astype(o_ref.dtype)     # (T, N_w, C)
    # TODO(synk): review #4 — v5e lane-dense store repack not applied here.
    o_ref[0] = out.reshape(blk_h, ws, C)


# ---------------------------------------------------------------------------
# Block-size heuristic (review #5/#6): largest divisor of n_wrows that keeps
# >= 8 grid steps (when possible) and fits a conservative VMEM budget.
# ---------------------------------------------------------------------------
def _pick_rows_per_block(n_wrows, total_window_blocks, N_w, C, num_heads, itemsize,
                         vmem_budget=20 * 1024 * 1024, min_steps=8):
    w_out = 2 * C + num_heads * C
    per_win = (4 * (2 * N_w * N_w + N_w * (w_out + C))   # scores + probs + qkv' + acc (f32)
               + 4 * N_w * C * itemsize)                 # double-buffered in/out block share
    max_r = max(1, vmem_budget // max(per_win, 1))
    target = min(min_steps, total_window_blocks)
    best = 1
    for r in range(1, n_wrows + 1):
        if n_wrows % r:
            continue
        if r > max_r:
            continue
        if total_window_blocks // r >= target:
            best = r
    return best


def window_attention_pallas(x4, kparams, *, num_heads, ws, compute_dtype,
                            approx_recip=True, rows_per_block=None):
    """x4: (B, Hp, Wp, C) with Hp, Wp multiples of ws."""
    B, Hp, Wp, C = x4.shape
    assert Hp % ws == 0 and Wp % ws == 0
    n_wrows, n_wcols = Hp // ws, Wp // ws
    N_w = ws * ws
    w_out = 2 * C + num_heads * C

    if rows_per_block is None:
        rows_per_block = _pick_rows_per_block(
            n_wrows, B * n_wrows * n_wcols, N_w, C, num_heads,
            jnp.dtype(compute_dtype).itemsize)
    R = rows_per_block
    assert n_wrows % R == 0

    kernel = partial(window_attn_kernel, num_heads=num_heads, ws=ws,
                     compute_dtype=compute_dtype, approx_recip=approx_recip)

    return pl.pallas_call(
        kernel,
        out_shape=jax.ShapeDtypeStruct((B, Hp, Wp, C), x4.dtype),
        grid=(B, n_wrows // R, n_wcols),
        in_specs=[
            # column slab of R stacked windows
            pl.BlockSpec((1, R * ws, ws, C), lambda b, i, j: (b, i, j, 0)),
            # fused weights / biases are grid-invariant (constant index_map)
            pl.BlockSpec((C, w_out), lambda b, i, j: (0, 0)),
            pl.BlockSpec((1, w_out), lambda b, i, j: (0, 0)),
            pl.BlockSpec((1, C), lambda b, i, j: (0, 0)),
        ],
        out_specs=pl.BlockSpec((1, R * ws, ws, C), lambda b, i, j: (b, i, j, 0)),
        compiler_params=pltpu.CompilerParams(
            dimension_semantics=("parallel", "parallel", "parallel"),
            vmem_limit_bytes=32 * 1024 * 1024,     # explicit; safe on v7x's 64 MiB VMEM
        ),
    )(x4, kparams["w_fused"], kparams["b_fused"], kparams["bproj"])


# ---------------------------------------------------------------------------
# One-time parameter transform: fold softmax scale into Q and Wproj into V.
# ---------------------------------------------------------------------------
def prepare_kernel_params(params, dim, num_heads, compute_dtype):
    hd = dim // num_heads
    scale = hd ** (-0.5)
    wqkv = params["wqkv_t"].astype(jnp.float32)              # (C, 3C), cols [Q|K|V]
    bqkv = params["bqkv"].astype(jnp.float32).reshape(1, 3 * dim)
    wproj = params["wproj_t"].astype(jnp.float32)             # (C, C)
    bproj = params["bproj"].astype(jnp.float32).reshape(1, dim)

    wq, bq = wqkv[:, :dim] * scale, bqkv[:, :dim] * scale      # scale folded into Q
    wk, bk = wqkv[:, dim:2 * dim], bqkv[:, dim:2 * dim]
    wv, bv = wqkv[:, 2 * dim:], bqkv[:, 2 * dim:]

    wv_f, bv_f = [], []
    for h in range(num_heads):                                  # Wproj folded into V
        wproj_h = wproj[h * hd:(h + 1) * hd, :]                 # (hd, C)
        wv_f.append(wv[:, h * hd:(h + 1) * hd] @ wproj_h)       # (C, C)
        bv_f.append(bv[:, h * hd:(h + 1) * hd] @ wproj_h)       # (1, C)  (bias folded too)

    w_fused = jnp.concatenate([wq, wk] + wv_f, axis=1)          # (C, 2C + nh*C)
    b_fused = jnp.concatenate([bq, bk] + bv_f, axis=1)
    return {
        "w_fused": w_fused.astype(compute_dtype),
        "b_fused": b_fused,          # f32: added to the f32 MXU accumulator
        "bproj": bproj,              # f32
    }


# ---------------------------------------------------------------------------
# Full module forward (glue + kernel)
# ---------------------------------------------------------------------------
def window_attention_forward(x, H, W, params, *, window_size, num_heads,
                             compute_dtype=jnp.float32, approx_recip=True,
                             rows_per_block=None):
    """x: (B_, N, C) with N == H*W. Output dtype == input dtype."""
    B_, N, C = x.shape
    ws_h, ws_w = window_size
    if ws_h != ws_w:
        # The PyTorch module partitions with window_size[0] on both spatial axes,
        # so only square windows are well-defined; mirror that.
        raise ValueError("WindowAttention requires square windows")
    ws = ws_h

    kparams = prepare_kernel_params(params, C, num_heads, compute_dtype)

    xr = x.reshape(B_, H, W, C)                      # free reshape
    pad_r = (ws - W % ws) % ws
    pad_b = (ws - H % ws) % ws
    if pad_r or pad_b:                               # only pad when actually needed
        xr = jnp.pad(xr, ((0, 0), (0, pad_b), (0, pad_r), (0, 0)))

    out = window_attention_pallas(xr, kparams, num_heads=num_heads, ws=ws,
                                  compute_dtype=compute_dtype,
                                  approx_recip=approx_recip,
                                  rows_per_block=rows_per_block)

    if pad_r or pad_b:
        out = out[:, :H, :W, :]
    return out.reshape(B_, H * W, C)


# ---------------------------------------------------------------------------
# Pure-JAX reference (mirrors the PyTorch forward) for correctness check
# ---------------------------------------------------------------------------
def window_attention_reference(x, H, W, params, *, window_size, num_heads):
    B_, N, C = x.shape
    ws_h, ws_w = window_size
    hd = C // num_heads
    scale = hd ** (-0.5)

    xr = x.reshape(B_, H, W, C)
    pad_r = (ws_w - W % ws_w) % ws_w
    pad_b = (ws_h - H % ws_h) % ws_h
    xr = jnp.pad(xr, ((0, 0), (0, pad_b), (0, pad_r), (0, 0)))
    Hp, Wp = xr.shape[1], xr.shape[2]
    xw = window_partition(xr, ws_h).reshape(-1, ws_w * ws_h, C)
    B_w, N_w, _ = xw.shape

    qkv = xw @ params["wqkv_t"] + params["bqkv"]
    qkv = qkv.reshape(B_w, N_w, 3, num_heads, hd)
    qkv = jnp.transpose(qkv, (2, 0, 3, 1, 4))
    q, k, v = qkv[0], qkv[1], qkv[2]
    attn = jnp.einsum("bhqd,bhkd->bhqk", q * scale, k)
    attn = jax.nn.softmax(attn, axis=-1)
    attn = jnp.where(jnp.isinf(attn) | jnp.isnan(attn), 0.0, attn)
    out = jnp.einsum("bhqk,bhkd->bhqd", attn, v)
    out = jnp.transpose(out, (0, 2, 1, 3)).reshape(B_w, N_w, C)
    out = out @ params["wproj_t"] + params["bproj"]
    out = out.reshape(-1, ws_w, ws_h, C)
    out = window_reverse(out, ws_h, Hp, Wp)
    if pad_r > 0 or pad_b > 0:
        out = out[:, :H, :W, :]
    return out.reshape(B_, H * W, C)


# ---------------------------------------------------------------------------
# main
# ---------------------------------------------------------------------------
if __name__ == "__main__":
    # TODO(synk): rel_pos_h / rel_pos_w (COMPAT params) are unused in the forward
    # (rel_pos_spatial=False path), so they are not materialized here.
    key = jax.random.PRNGKey(0)

    dim = 32
    num_heads = 4
    window_size = (8, 8)
    B_, H, W = 2, 16, 16
    N = H * W

    k_x, k_x2, k_wq, k_bq, k_wp, k_bp = jax.random.split(key, 6)

    x = jax.random.normal(k_x, (B_, N, dim), dtype=jnp.float32)

    # nn.Linear(dim, 3*dim) / nn.Linear(dim, dim), stored pre-transposed as (in, out)
    lin_scale = 1.0 / math.sqrt(dim)
    params = {
        "wqkv_t": jax.random.uniform(k_wq, (dim, 3 * dim), jnp.float32,
                                     -lin_scale, lin_scale),
        "bqkv":   jax.random.uniform(k_bq, (1, 3 * dim), jnp.float32,
                                     -lin_scale, lin_scale),
        "wproj_t": jax.random.uniform(k_wp, (dim, dim), jnp.float32,
                                      -lin_scale, lin_scale),
        "bproj":  jax.random.uniform(k_bp, (1, dim), jnp.float32,
                                     -lin_scale, lin_scale),
    }

    ref = window_attention_reference(x, H, W, params,
                                     window_size=window_size, num_heads=num_heads)
    ref = jax.block_until_ready(ref)

    # f32 path with exact reciprocal: strict parity check.
    out_f32 = window_attention_forward(x, H, W, params,
                                       window_size=window_size, num_heads=num_heads,
                                       compute_dtype=jnp.float32, approx_recip=False)
    out_f32 = jax.block_until_ready(out_f32)
    assert out_f32.shape == (B_, N, dim), out_f32.shape
    err_f32 = float(jnp.max(jnp.abs(out_f32 - ref)))
    assert err_f32 < 1e-4, err_f32

    # bf16-matmul / f32-accumulate path with production-default approx reciprocal.
    out_bf16 = window_attention_forward(x, H, W, params,
                                        window_size=window_size, num_heads=num_heads,
                                        compute_dtype=jnp.bfloat16)
    out_bf16 = jax.block_until_ready(out_bf16)
    err_bf16 = float(jnp.max(jnp.abs(out_bf16.astype(jnp.float32) - ref)))
    assert err_bf16 < 5e-2, err_bf16

    # Edge-padding path (H, W not multiples of ws), exercising the zero-pad + crop.
    H2 = W2 = 12
    x2 = jax.random.normal(k_x2, (B_, H2 * W2, dim), dtype=jnp.float32)
    ref2 = window_attention_reference(x2, H2, W2, params,
                                      window_size=window_size, num_heads=num_heads)
    out2 = window_attention_forward(x2, H2, W2, params,
                                    window_size=window_size, num_heads=num_heads,
                                    compute_dtype=jnp.float32, approx_recip=False)
    out2 = jax.block_until_ready(out2)
    err2 = float(jnp.max(jnp.abs(out2 - ref2)))
    assert out2.shape == (B_, H2 * W2, dim), out2.shape
    assert err2 < 1e-4, err2

    print("KERNEL_OK")
</pallas_src>

<mosaic_0001>
module attributes {stable_mosaic.version = 11 : i64} {
  func.func @window_attn_kernel(%arg0: i32, %arg1: i32, %arg2: i32, %arg3: memref<1x8x8x32xf32, #tpu.memory_space<vmem>>, %arg4: memref<32x192xf32, #tpu.memory_space<vmem>>, %arg5: memref<1x192xf32, #tpu.memory_space<vmem>>, %arg6: memref<1x32xf32, #tpu.memory_space<vmem>>, %arg7: memref<1x8x8x32xf32, #tpu.memory_space<vmem>>) attributes {dimension_semantics = [#tpu.dimension_semantics<parallel>, #tpu.dimension_semantics<parallel>, #tpu.dimension_semantics<parallel>], iteration_bounds = array<i64: 2, 2, 2>, scalar_prefetch = 0 : i64, scratch_operands = 0 : i64, tpu.core_type = #tpu.core_type<tc>, window_params = [{transform_indices = @transform_0, window_bounds = array<i64: 1, 8, 8, 32>}, {pipeline_mode = #tpu.pipeline_mode<synchronous>, transform_indices = @transform_1, window_bounds = array<i64: 32, 192>}, {pipeline_mode = #tpu.pipeline_mode<synchronous>, transform_indices = @transform_2, window_bounds = array<i64: 1, 192>}, {pipeline_mode = #tpu.pipeline_mode<synchronous>, transform_indices = @transform_3, window_bounds = array<i64: 1, 32>}, {transform_indices = @transform_4, window_bounds = array<i64: 1, 8, 8, 32>}]} {
    %c0 = arith.constant 0 : index
    %c0_0 = arith.constant 0 : index
    %c0_1 = arith.constant 0 : index
    %c0_2 = arith.constant 0 : index
    %0 = vector.load %arg3[%c0, %c0_0, %c0_1, %c0_2] : memref<1x8x8x32xf32, #tpu.memory_space<vmem>>, vector<1x8x8x32xf32>
    %1 = vector.shape_cast %0 : vector<1x8x8x32xf32> to vector<8x8x32xf32>
    %2 = vector.shape_cast %1 : vector<8x8x32xf32> to vector<64x32xf32>
    %c0_3 = arith.constant 0 : index
    %c0_4 = arith.constant 0 : index
    %3 = vector.load %arg4[%c0_3, %c0_4] : memref<32x192xf32, #tpu.memory_space<vmem>>, vector<32x192xf32>
    %cst = arith.constant dense<0.000000e+00> : vector<64x192xf32>
    %4 = tpu.matmul %2, %3, %cst {dimension_numbers = #tpu.dot_dimension_numbers<[1], [0], [0], [1], [0, 0, 1, 1], [], []>} : vector<64x32xf32>, vector<32x192xf32>, vector<64x192xf32> -> vector<64x192xf32>
    %c0_5 = arith.constant 0 : index
    %c0_6 = arith.constant 0 : index
    %5 = vector.load %arg5[%c0_5, %c0_6] : memref<1x192xf32, #tpu.memory_space<vmem>>, vector<1x192xf32>
    %6 = vector.broadcast %5 : vector<1x192xf32> to vector<64x192xf32>
    %7 = arith.addf %4, %6 : vector<64x192xf32>
    %8 = vector.shape_cast %7 : vector<64x192xf32> to vector<1x64x192xf32>
    %cst_7 = arith.constant 0.000000e+00 : f32
    %9 = vector.broadcast %cst_7 : f32 to vector<1x64x32xf32>
    %10 = vector.extract_strided_slice %8 {offsets = [0, 0, 0], sizes = [1, 64, 8], strides = [1, 1, 1]} : vector<1x64x192xf32> to vector<1x64x8xf32>
    %11 = vector.extract_strided_slice %8 {offsets = [0, 0, 32], sizes = [1, 64, 8], strides = [1, 1, 1]} : vector<1x64x192xf32> to vector<1x64x8xf32>
    %12 = vector.extract_strided_slice %8 {offsets = [0, 0, 64], sizes = [1, 64, 32], strides = [1, 1, 1]} : vector<1x64x192xf32> to vector<1x64x32xf32>
    "tpu.trace_start"() <{level = 10 : i32, message = "tqd,tkd->tqk"}> : () -> ()
    %cst_8 = arith.constant dense<0.000000e+00> : vector<1x64x64xf32>
    %13 = tpu.matmul %10, %11, %cst_8 {dimension_numbers = #tpu.dot_dimension_numbers<[2], [2], [1], [1], [0, 0, 0, 1, 1, 1], [0], [0]>} : vector<1x64x8xf32>, vector<1x64x8xf32>, vector<1x64x64xf32> -> vector<1x64x64xf32>
    "tpu.trace_stop"() : () -> ()
    %cst_9 = arith.constant dense<0xFF800000> : vector<1x64xf32>
    %14 = vector.multi_reduction <maximumf>, %13, %cst_9 [2] : vector<1x64x64xf32> to vector<1x64xf32>
    %15 = vector.shape_cast %14 : vector<1x64xf32> to vector<1x64x1xf32>
    %16 = vector.broadcast %15 : vector<1x64x1xf32> to vector<1x64x64xf32>
    %17 = arith.subf %13, %16 : vector<1x64x64xf32>
    %18 = math.exp %17 : vector<1x64x64xf32>
    %cst_10 = arith.constant dense<0.000000e+00> : vector<1x64xf32>
    %19 = vector.multi_reduction <add>, %18, %cst_10 [2] : vector<1x64x64xf32> to vector<1x64xf32>
    %20 = vector.shape_cast %19 : vector<1x64xf32> to vector<1x64x1xf32>
    %21 = tpu.reciprocal %20 : vector<1x64x1xf32> -> vector<1x64x1xf32>
    %22 = vector.broadcast %21 : vector<1x64x1xf32> to vector<1x64x64xf32>
    %23 = arith.mulf %18, %22 : vector<1x64x64xf32>
    "tpu.trace_start"() <{level = 10 : i32, message = "tqk,tkd->tqd"}> : () -> ()
    %cst_11 = arith.constant dense<0.000000e+00> : vector<1x64x32xf32>
    %24 = tpu.matmul %23, %12, %cst_11 {dimension_numbers = #tpu.dot_dimension_numbers<[2], [1], [1], [2], [0, 0, 0, 1, 1, 2], [0], [0]>} : vector<1x64x64xf32>, vector<1x64x32xf32>, vector<1x64x32xf32> -> vector<1x64x32xf32>
    "tpu.trace_stop"() : () -> ()
    %25 = arith.addf %9, %24 : vector<1x64x32xf32>
    %26 = vector.extract_strided_slice %8 {offsets = [0, 0, 8], sizes = [1, 64, 8], strides = [1, 1, 1]} : vector<1x64x192xf32> to vector<1x64x8xf32>
    %27 = vector.extract_strided_slice %8 {offsets = [0, 0, 40], sizes = [1, 64, 8], strides = [1, 1, 1]} : vector<1x64x192xf32> to vector<1x64x8xf32>
    %28 = vector.extract_strided_slice %8 {offsets = [0, 0, 96], sizes = [1, 64, 32], strides = [1, 1, 1]} : vector<1x64x192xf32> to vector<1x64x32xf32>
    "tpu.trace_start"() <{level = 10 : i32, message = "tqd,tkd->tqk"}> : () -> ()
    %cst_12 = arith.constant dense<0.000000e+00> : vector<1x64x64xf32>
    %29 = tpu.matmul %26, %27, %cst_12 {dimension_numbers = #tpu.dot_dimension_numbers<[2], [2], [1], [1], [0, 0, 0, 1, 1, 1], [0], [0]>} : vector<1x64x8xf32>, vector<1x64x8xf32>, vector<1x64x64xf32> -> vector<1x64x64xf32>
    "tpu.trace_stop"() : () -> ()
    %cst_13 = arith.constant dense<0xFF800000> : vector<1x64xf32>
    %30 = vector.multi_reduction <maximumf>, %29, %cst_13 [2] : vector<1x64x64xf32> to vector<1x64xf32>
    %31 = vector.shape_cast %30 : vector<1x64xf32> to vector<1x64x1xf32>
    %32 = vector.broadcast %31 : vector<1x64x1xf32> to vector<1x64x64xf32>
    %33 = arith.subf %29, %32 : vector<1x64x64xf32>
    %34 = math.exp %33 : vector<1x64x64xf32>
    %cst_14 = arith.constant dense<0.000000e+00> : vector<1x64xf32>
    %35 = vector.multi_reduction <add>, %34, %cst_14 [2] : vector<1x64x64xf32> to vector<1x64xf32>
    %36 = vector.shape_cast %35 : vector<1x64xf32> to vector<1x64x1xf32>
    %37 = tpu.reciprocal %36 : vector<1x64x1xf32> -> vector<1x64x1xf32>
    %38 = vector.broadcast %37 : vector<1x64x1xf32> to vector<1x64x64xf32>
    %39 = arith.mulf %34, %38 : vector<1x64x64xf32>
    "tpu.trace_start"() <{level = 10 : i32, message = "tqk,tkd->tqd"}> : () -> ()
    %cst_15 = arith.constant dense<0.000000e+00> : vector<1x64x32xf32>
    %40 = tpu.matmul %39, %28, %cst_15 {dimension_numbers = #tpu.dot_dimension_numbers<[2], [1], [1], [2], [0, 0, 0, 1, 1, 2], [0], [0]>} : vector<1x64x64xf32>, vector<1x64x32xf32>, vector<1x64x32xf32> -> vector<1x64x32xf32>
    "tpu.trace_stop"() : () -> ()
    %41 = arith.addf %25, %40 : vector<1x64x32xf32>
    %42 = vector.extract_strided_slice %8 {offsets = [0, 0, 16], sizes = [1, 64, 8], strides = [1, 1, 1]} : vector<1x64x192xf32> to vector<1x64x8xf32>
    %43 = vector.extract_strided_slice %8 {offsets = [0, 0, 48], sizes = [1, 64, 8], strides = [1, 1, 1]} : vector<1x64x192xf32> to vector<1x64x8xf32>
    %44 = vector.extract_strided_slice %8 {offsets = [0, 0, 128], sizes = [1, 64, 32], strides = [1, 1, 1]} : vector<1x64x192xf32> to vector<1x64x32xf32>
    "tpu.trace_start"() <{level = 10 : i32, message = "tqd,tkd->tqk"}> : () -> ()
    %cst_16 = arith.constant dense<0.000000e+00> : vector<1x64x64xf32>
    %45 = tpu.matmul %42, %43, %cst_16 {dimension_numbers = #tpu.dot_dimension_numbers<[2], [2], [1], [1], [0, 0, 0, 1, 1, 1], [0], [0]>} : vector<1x64x8xf32>, vector<1x64x8xf32>, vector<1x64x64xf32> -> vector<1x64x64xf32>
    "tpu.trace_stop"() : () -> ()
    %cst_17 = arith.constant dense<0xFF800000> : vector<1x64xf32>
    %46 = vector.multi_reduction <maximumf>, %45, %cst_17 [2] : vector<1x64x64xf32> to vector<1x64xf32>
    %47 = vector.shape_cast %46 : vector<1x64xf32> to vector<1x64x1xf32>
    %48 = vector.broadcast %47 : vector<1x64x1xf32> to vector<1x64x64xf32>
    %49 = arith.subf %45, %48 : vector<1x64x64xf32>
    %50 = math.exp %49 : vector<1x64x64xf32>
    %cst_18 = arith.constant dense<0.000000e+00> : vector<1x64xf32>
    %51 = vector.multi_reduction <add>, %50, %cst_18 [2] : vector<1x64x64xf32> to vector<1x64xf32>
    %52 = vector.shape_cast %51 : vector<1x64xf32> to vector<1x64x1xf32>
    %53 = tpu.reciprocal %52 : vector<1x64x1xf32> -> vector<1x64x1xf32>
    %54 = vector.broadcast %53 : vector<1x64x1xf32> to vector<1x64x64xf32>
    %55 = arith.mulf %50, %54 : vector<1x64x64xf32>
    "tpu.trace_start"() <{level = 10 : i32, message = "tqk,tkd->tqd"}> : () -> ()
    %cst_19 = arith.constant dense<0.000000e+00> : vector<1x64x32xf32>
    %56 = tpu.matmul %55, %44, %cst_19 {dimension_numbers = #tpu.dot_dimension_numbers<[2], [1], [1], [2], [0, 0, 0, 1, 1, 2], [0], [0]>} : vector<1x64x64xf32>, vector<1x64x32xf32>, vector<1x64x32xf32> -> vector<1x64x32xf32>
    "tpu.trace_stop"() : () -> ()
    %57 = arith.addf %41, %56 : vector<1x64x32xf32>
    %58 = vector.extract_strided_slice %8 {offsets = [0, 0, 24], sizes = [1, 64, 8], strides = [1, 1, 1]} : vector<1x64x192xf32> to vector<1x64x8xf32>
    %59 = vector.extract_strided_slice %8 {offsets = [0, 0, 56], sizes = [1, 64, 8], strides = [1, 1, 1]} : vector<1x64x192xf32> to vector<1x64x8xf32>
    %60 = vector.extract_strided_slice %8 {offsets = [0, 0, 160], sizes = [1, 64, 32], strides = [1, 1, 1]} : vector<1x64x192xf32> to vector<1x64x32xf32>
    "tpu.trace_start"() <{level = 10 : i32, message = "tqd,tkd->tqk"}> : () -> ()
    %cst_20 = arith.constant dense<0.000000e+00> : vector<1x64x64xf32>
    %61 = tpu.matmul %58, %59, %cst_20 {dimension_numbers = #tpu.dot_dimension_numbers<[2], [2], [1], [1], [0, 0, 0, 1, 1, 1], [0], [0]>} : vector<1x64x8xf32>, vector<1x64x8xf32>, vector<1x64x64xf32> -> vector<1x64x64xf32>
    "tpu.trace_stop"() : () -> ()
    %cst_21 = arith.constant dense<0xFF800000> : vector<1x64xf32>
    %62 = vector.multi_reduction <maximumf>, %61, %cst_21 [2] : vector<1x64x64xf32> to vector<1x64xf32>
    %63 = vector.shape_cast %62 : vector<1x64xf32> to vector<1x64x1xf32>
    %64 = vector.broadcast %63 : vector<1x64x1xf32> to vector<1x64x64xf32>
    %65 = arith.subf %61, %64 : vector<1x64x64xf32>
    %66 = math.exp %65 : vector<1x64x64xf32>
    %cst_22 = arith.constant dense<0.000000e+00> : vector<1x64xf32>
    %67 = vector.multi_reduction <add>, %66, %cst_22 [2] : vector<1x64x64xf32> to vector<1x64xf32>
    %68 = vector.shape_cast %67 : vector<1x64xf32> to vector<1x64x1xf32>
    %69 = tpu.reciprocal %68 : vector<1x64x1xf32> -> vector<1x64x1xf32>
    %70 = vector.broadcast %69 : vector<1x64x1xf32> to vector<1x64x64xf32>
    %71 = arith.mulf %66, %70 : vector<1x64x64xf32>
    "tpu.trace_start"() <{level = 10 : i32, message = "tqk,tkd->tqd"}> : () -> ()
    %cst_23 = arith.constant dense<0.000000e+00> : vector<1x64x32xf32>
    %72 = tpu.matmul %71, %60, %cst_23 {dimension_numbers = #tpu.dot_dimension_numbers<[2], [1], [1], [2], [0, 0, 0, 1, 1, 2], [0], [0]>} : vector<1x64x64xf32>, vector<1x64x32xf32>, vector<1x64x32xf32> -> vector<1x64x32xf32>
    "tpu.trace_stop"() : () -> ()
    %73 = arith.addf %57, %72 : vector<1x64x32xf32>
    %c0_24 = arith.constant 0 : index
    %c0_25 = arith.constant 0 : index
    %74 = vector.load %arg6[%c0_24, %c0_25] : memref<1x32xf32, #tpu.memory_space<vmem>>, vector<1x32xf32>
    %75 = vector.shape_cast %74 : vector<1x32xf32> to vector<1x1x32xf32>
    %76 = vector.broadcast %75 : vector<1x1x32xf32> to vector<1x64x32xf32>
    %77 = arith.addf %73, %76 : vector<1x64x32xf32>
    %78 = vector.shape_cast %77 : vector<1x64x32xf32> to vector<8x8x32xf32>
    %c0_26 = arith.constant 0 : index
    %c0_27 = arith.constant 0 : index
    %c0_28 = arith.constant 0 : index
    %c0_29 = arith.constant 0 : index
    %79 = vector.load %arg7[%c0_26, %c0_27, %c0_28, %c0_29] : memref<1x8x8x32xf32, #tpu.memory_space<vmem>>, vector<1x8x8x32xf32>
    %80 = vector.shape_cast %79 : vector<1x8x8x32xf32> to vector<8x8x32xf32>
    %81 = vector.shape_cast %78 : vector<8x8x32xf32> to vector<1x8x8x32xf32>
    tpu.vector_store %arg7[%c0_26, %c0_27, %c0_28, %c0_29], %81 {strides = array<i32>} : memref<1x8x8x32xf32, #tpu.memory_space<vmem>>, vector<1x8x8x32xf32>,
    return
  }
  func.func @transform_0(%arg0: i32, %arg1: i32, %arg2: i32) -> (i32, i32, i32, i32) {
    %c0_i32 = arith.constant 0 : i32
    %c0_i32_0 = arith.constant 0 : i32
    return %arg0, %arg1, %arg2, %c0_i32 : i32, i32, i32, i32
  }
  func.func @transform_1(%arg0: i32, %arg1: i32, %arg2: i32) -> (i32, i32) {
    %c0_i32 = arith.constant 0 : i32
    %c0_i32_0 = arith.constant 0 : i32
    %c0_i32_1 = arith.constant 0 : i32
    return %c0_i32, %c0_i32_0 : i32, i32
  }
  func.func @transform_2(%arg0: i32, %arg1: i32, %arg2: i32) -> (i32, i32) {
    %c0_i32 = arith.constant 0 : i32
    %c0_i32_0 = arith.constant 0 : i32
    %c0_i32_1 = arith.constant 0 : i32
    return %c0_i32, %c0_i32_0 : i32, i32
  }
  func.func @transform_3(%arg0: i32, %arg1: i32, %arg2: i32) -> (i32, i32) {
    %c0_i32 = arith.constant 0 : i32
    %c0_i32_0 = arith.constant 0 : i32
    %c0_i32_1 = arith.constant 0 : i32
    return %c0_i32, %c0_i32_0 : i32, i32
  }
  func.func @transform_4(%arg0: i32, %arg1: i32, %arg2: i32) -> (i32, i32, i32, i32) {
    %c0_i32 = arith.constant 0 : i32
    %c0_i32_0 = arith.constant 0 : i32
    return %arg0, %arg1, %arg2, %c0_i32 : i32, i32, i32, i32
  }
}

</mosaic_0001>

<bundles_post_ra>
// kernel: tpu_custom_call.1
= control target key start
LH: loop header
LB: loop body
LE: loop exit
PB: predicated region body
PF: predicated region fallthrough
CT: control target
= control target key end

     0   :  { %s4071_s0 = inlined_call_operand.hbm [shape: f32[2,16,16,32], index: 0, kind: input, shape index: {}]   ;;  %s4072_s1 = inlined_call_operand.hbm [shape: f32[32,192], index: 1, kind: input, shape index: {}]   ;;  %s4073_s2 = inlined_call_operand.vmem [shape: f32[1,192], index: 2, kind: input, shape index: {}]   ;;  %s4074_s3 = inlined_call_operand.vmem [shape: f32[1,32], index: 3, kind: input, shape index: {}]   ;;  %s4075_s4 = inlined_call_operand.hbm [shape: f32[2,16,16,32], index: 4, kind: output, shape index: {}]  }
   0x1   :  { %4088 = sst [smem:[#allocation19_spill]] %s4072_s1 }
   0x2   :  { %4089 = sst [smem:[#allocation20_spill]] %s4074_s3 }
   0x3   :  { %4090 = sst [smem:[#allocation21_spill]] %s4075_s4 }
   0x4   :  { %9 = vsyncpa [#allocation3], 0 }
   0x5   :  { %11 = vsyncpa [#allocation3 + $0x1], 0 }
   0x6   :  { %12 = vsyncpa [#allocation6], 0 }
   0x7   :  { %13 = vsyncpa [#allocation4], 0 }
   0x8   :  { %15 = vsyncpa [#allocation4 + $0x1], 0  ;;  %s3160_s15 = smov 0   ;;  %s3162_s16 = smov 0  }
   0x9   :  { %s3164_s17 = smov 0   ;;  %s3166_s18 = smov 0  }
   0xa   :  { %s3168_s19 = smov 0   ;;  %s3170_s20 = smov 0  }
   0xb   :  { %s3172_s21 = smov 0   ;;  %s3174_s22 = smov 0  }
   0xc   :  { %s3176_s23 = smov 0   ;;  %s3178_s24 = smov 0  }
   0xd LB: > { %4091 = sst [smem:[#allocation11_spill]] %s3077_s15  ;;  %s2213_s25 = sadd.s32 4294967295, %s3113_s24   ;;  %s3113_s24 = sphi %s3178_s24, %s21_s24   ;;  %s3109_s23 = sphi %s3176_s23, %s4130_s23   ;;  %s3105_s22 = sphi %s3174_s22, %s4129_s22   ;;  %s3101_s21 = sphi %s3172_s21, %s4128_s21   ;;  %s3097_s20 = sphi %s3170_s20, %s4127_s20   ;;  %s3093_s19 = sphi %s3168_s19, %s4126_s19   ;;  %s3089_s18 = sphi %s3166_s18, %s4125_s18   ;;  %s3085_s17 = sphi %s3164_s17, %s4124_s17   ;;  %s3081_s16 = sphi %s3162_s16, %s4123_s16   ;;  %s3077_s15 = sphi %s3160_s15, %s4122_s15  }
   0xe   : > { %4092 = sst [smem:[#allocation12_spill]] %s3089_s18  ;;  %s2214_s26 = sadd.s32 4294967294, %s3113_s24  }
   0xf   : > { %4093 = sst [smem:[#allocation13_spill]] %s3093_s19  ;;  %p58_p0 = scmp.ne.s32.totalorder %s3085_s17, %s3081_s16 }
  0x10   : > { %4094 = sst [smem:[#allocation14_spill]] %s3097_s20  ;;  %p64_p1 = scmp.ne.s32.totalorder %s3081_s16, %s3077_s15 }
  0x11   : > { %4095 = sst [smem:[#allocation15_spill]] %s3113_s24  ;;  %p3216_p2 = scmp.eq.s32.totalorder %s2213_s25, 0 }
  0x12   : > { %p155_p3 = scmp.eq.s32.totalorder %s2213_s25, 7  ;;  %p59_p4 = scmp.eq.s32.totalorder %s3113_s24, 0 }
  0x13   : > { %p161_p5 = scmp.eq.s32.totalorder %s2214_s26, 7  ;;  %p3223_p6 = por %p3216_p2, %p64_p1 }
  0x14   : > { %p3227_p7 = por %p155_p3, %p58_p0  ;;  %p2215_p9 = scmp.ge.s32.totalorder %s3113_s24, 1 }
  0x15   : > { %s4097_s28 = scalar_select %p3223_p6, 1, 0 }
  0x16   : > { %s4098_s29 = scalar_select %p3227_p7, 1, 0 }
  0x17   : > { %p3231_p8 = por %p161_p5, %p64_p1  ;;  %p168_p10 = scmp.lt.s32.totalorder %s3113_s24, 9 }
  0x18   : > { %4099 = sst [smem:[#allocation16_spill]] %s4098_s29  ;;  %p60_p11 = por %p59_p4, %p58_p0 }
  0x19   : > { %s4100_s30 = scalar_select %p3231_p8, 1, 0 }
  0x1a   : > { %p3237_p12 = pnand %p2215_p9, %p168_p10  ;;  %s3115_s6 = smov [#allocation5]  }
  0x1b   : > { %4101 = sst [smem:[#allocation17_spill]] %s4100_s30  ;;  %s180_s7 = sshll.u32 %s3115_s6, 4  ;;  %s181_s7 = int_to_ptr.vmem [resolvable:$true] %s180_s7 }
  0x1c   : > { %s4102_s5 = scalar_select %p3237_p12, 1, 0 }
  0x1d   : > { %p2701_p13 = pneg %p3237_p12  ;;  %p2714_p3 = scmp.lt.s32.totalorder %s3113_s24, 8 }
  0x1e   : > { %s2954_s10 = scalar_lea.vmem %s181_s7, 1024  ;;  %p2962_p10 = scmp.lt.s32.totalorder %s181_s7, %s181_s7 }
  0x1f   : > { %p3246_p7 = pnand %p2701_p13, %p3216_p2  ;;  %p3250_p1 = pnand %p2714_p3, %p60_p11 }
  0x20   : > { %p2955_p4 = scmp.ne.s32.totalorder %s181_s7, %s2954_s10  ;;  %p2963_p8 = scmp.lt.s32.totalorder %s2954_s10, %s2954_s10 }
  0x21   : > { %p2945_p0 = pneg %p3246_p7 }
  0x22   : > { %p2964_p6 = por %p2963_p8, %p2962_p10 }
  0x23   : > { %p2957_p5 = pnand %p2955_p4, %p2945_p0 }
  0x25   : > { %p2958_p9 = pneg %p2957_p5 }
  0x27   : > { %p2965_p12 = pnand %p2964_p6, %p2958_p9 }
  0x29   : > { %2968 = shalt.err (!%p2965_p12)
}
  0x2a   : > { %s4083_s11 = smov 256   ;;  %s3117_s12 = smov 16  }
  0x2b   : > { %s4105_s1 = sld [smem:[#allocation19_spill]]  ;;  %s33_s25 = sadd.s32 1, %s3101_s21 }
  0x2c   : > { %s36_s26 = sadd.s32 1, %s3105_s22  ;;  %p34_p6 = scmp.ge.s32.totalorder %s33_s25, 2 }
  0x2d   : > { %s200_s6 = sand.u32 1, %s3085_s17   ;;  %s40_s10 = sadd.s32 1, %s3109_s23 }
  0x2e   : > { %s2218_s30 = sshll.u32 %s200_s6, 6  ;;  %s4132_s25 = smov (%p34_p6, %s33_s25), 0 }
  0x2f   : > { %4106 = sst [smem:[#allocation18_spill]] %s4132_s25  ;;  %s4134_s26 = smov (!%p34_p6, %s36_s26), %s3105_s22 }
  0x30   : > { %p38_p8 = scmp.ge.s32.totalorder %s4134_s26, 2  ;;  %s2339_s8 = sshll.u32 %s3105_s22, 4 }
  0x31   : > { %2704 = dma.hbm_to_vmem [thread:$0]  (!%p3246_p7), %s4105_s1, 1024, %s181_s7, [#allocation6], %s4083_s11, %s4083_s11, %s3117_s12  }
  0x32   : > { %s210_s15 = sadd.s32 %s3101_s21, %s2339_s8  ;;  %s2221_s24 = sshll.u32 %s3109_s23, 5 }
  0x33   : > { %s4136_s26 = smov (%p38_p8, %s4134_s26), 0  ;;  %s4138_s10 = smov (!%p38_p8, %s40_s10), %s3109_s23 }
  0x34   : > { %s47_s7 = ssub.s32 %s3101_s21, %s4132_s25  ;;  %s212_s12 = sadd.s32 %s2221_s24, %s210_s15 }
  0x35   : > { %p42_p7 = scmp.ge.s32.totalorder %s4138_s10, 2  ;;  %s2222_s13 = sshll.u32 %s212_s12, 7 }
  0x36   : > { %s45_s14 = ssub.s32 %s3105_s22, %s4136_s26  ;;  %s204_s11 = scalar_lea.vmem [#allocation2], %s2218_s30 }
  0x37   : > { %s215_s1 = sshll.u32 %s204_s11, 4  ;;  %s4140_s10 = smov (%p42_p7, %s4138_s10), 0  ;;  %s216_s1 = int_to_ptr.vmem [resolvable:$true] %s215_s1 }
  0x38   : > { %s214_s8 = scalar_lea.hbm %s4071_s0, %s2222_s13  ;;  %s44_s20 = ssub.s32 %s3109_s23, %s4140_s10 }
  0x39   : > { %s46_s18 = sor.u32 %s45_s14, %s44_s20  ;;  %s51_s3 = sadd.s32 1, %s3085_s17 }
  0x3a   : > { %s48_s19 = sor.u32 %s47_s7, %s46_s18  ;;  %s201_s25 = scalar_lea.sflag [#allocation3], %s200_s6 }
  0x3b   : > { %p49_p11 = scmp.eq.s32.totalorder %s48_s19, 0  ;;  %p2971_p12 = pneg %p3250_p1 }
  0x3c   : > { %s2982_s15 = scalar_lea.vmem %s216_s1, 1024  ;;  %s3118_s24 = smov [#allocation2]  }
  0x3d   : > { %p2983_p13 = scmp.ne.s32.totalorder %s216_s1, %s2982_s15  ;;  %s2987_s30 = sshll.u32 %s3118_s24, 4  ;;  %s2988_s30 = int_to_ptr.vmem [resolvable:$false] %s2987_s30 }
  0x3e   : > { %s2989_s11 = scalar_lea.vmem %s2988_s30, 2048  ;;  %p2990_p4 = scmp.lt.s32.totalorder %s216_s1, %s2988_s30 }
  0x3f   : > { %p2985_p3 = pnand %p2983_p13, %p2971_p12  ;;  %p2991_p5 = scmp.lt.s32.totalorder %s2989_s11, %s2982_s15 }
  0x41   : > { %p2986_p0 = pneg %p2985_p3  ;;  %p2992_p9 = por %p2991_p5, %p2990_p4 }
  0x43   : > { %p2993_p10 = pnand %p2992_p9, %p2986_p0 }
  0x45   : > { %2996 = shalt.err (!%p2993_p10)
}
  0x46   : > { %s3119_s4 = smov 128   ;;  %s3120_s18 = smov 8  }
  0x47   : > { %s4107_s20 = smov 256   ;;  %p4108_p6 = scmp.ne.s32.totalorder %s4102_s5, 0 }
  0x48   : > { %2708 = dma.hbm_to_vmem [thread:$0]  (!%p3250_p1), %s214_s8, 1024, %s216_s1, %s201_s25, %s4107_s20, %s3119_s4, %s3120_s18  }
  0x49   : > { %s3295_s29 = scalar_select %p49_p11, %s3085_s17, %s51_s3  }
  0x4a   : > { %227 = sbr.rel (%p4108_p6) target bundleno = 2398 (0x95e), region = 36  ;;  %s3300_s6 = sand.u32 (!%p4108_p6), 1, %s3081_s16  }
  0x4b   : > { %s2224_s7 = sshll.u32 (!%p4108_p6), %s3300_s6, 6  ;;  %s230_s12 = scalar_lea.sflag (!%p4108_p6), [#allocation3], %s3300_s6 }
  0x4c   : > { %s3306_s13 = scalar_lea.vmem (!%p4108_p6), [#allocation2], %s2224_s7  ;;  %p4109_p8 = scmp.ne.s32.totalorder (!%p4108_p6), %s4097_s28, 0 }
  0x4f   : > { %3064 = dma.done.wait (%p4109_p8), %s230_s12, 1024  }
  0x50   : > { %3066 = vsyncadd (%p4109_p8), %s230_s12, 4294966272 }
  0x51   : > { %3068 = dma.done.wait (%p3216_p2), [#allocation6], 1024  }
  0x52   : > { %3070 = vsyncadd (%p3216_p2), [#allocation6], 4294966272  ;;  %v3121_v0 = vmov 0.0   ;;  %v279_v1 = vld [vmem:[#allocation5 + $0x38] sm:$0xff]  ;;  %v278_v2 = vld [vmem:[#allocation5 + $0x30] sm:$0xff]  ;;  %vm292_vm0 = vcmask 261120   ;;  %v282_v17 = vlaneseq }
  0x53   : > { %381 = vmatprep.mubr.f32.mxu0 %v3121_v0  ;;  %v277_v3 = vld [vmem:[#allocation5 + $0x28] sm:$0xff]  ;;  %341 = vmatprep.subr.mxu0 %v279_v1  ;;  %v276_v4 = vld [vmem:[#allocation5 + $0x20] sm:$0xff]  ;;  %v275_v5 = vld [vmem:[#allocation5 + $0x18] sm:$0xff]  ;;  %vm454_vm1 = vcmask 64512   ;;  %s3122_s19 = smov 88   ;;  %s3123_s27 = smov 120  }
  0x54   : > { %342 = vmatpush1.msra.mxu0 %v278_v2  ;;  %v274_v6 = vld [vmem:[#allocation5 + $0x10] sm:$0xff]  ;;  %v273_v7 = vld [vmem:[#allocation5 + $0x8] sm:$0xff]  ;;  %v272_v8 = vld [vmem:[#allocation5] sm:$0xff]  ;;  %v3332_v18 = vshrl.u32 %v282_v17, 7  ;;  %s3124_s28 = smov 96   ;;  %s3125_s5 = smov 32  }
  0x55   : > { %343 = vmatprep.subr.mxu0 %v277_v3  ;;  %v264_v9 = vld [vmem:[%s3306_s13] sm:$0xff]  ;;  %v265_v10 = vld [vmem:[%s3306_s13 + $0x8] sm:$0xff]  ;;  %v266_v11 = vld [vmem:[%s3306_s13 + $0x10] sm:$0xff]  ;;  %s3126_s9 = smov 80   ;;  %vm592_vm2 = vcmask 523264   ;;  %s3127_s25 = smov 112  }
  0x56   : > { %344 = vmatpush1.msra.mxu0 %v276_v4  ;;  %v267_v12 = vld [vmem:[%s3306_s13 + $0x18] sm:$0xff]  ;;  %v268_v13 = vld [vmem:[%s3306_s13 + $0x20] sm:$0xff]  ;;  %v269_v14 = vld [vmem:[%s3306_s13 + $0x28] sm:$0xff]  ;;  %v284_v19 = vsub.s32 0, %v3332_v18  ;;  %s3128_s14 = smov 64   ;;  %s3129_s8 = smov 72  }
  0x57   : > { %345 = vmatprep.subr.mxu0 %v275_v5  ;;  %v270_v15 = vld [vmem:[%s3306_s13 + $0x30] sm:$0xff]  ;;  %v271_v16 = vld [vmem:[%s3306_s13 + $0x38] sm:$0xff]  ;;  %v3338_v20 = vld [vmem:[%s4073_s2] sm:$0x3]  ;;  %s3130_s15 = smov 104   ;;  %s4110_s24 = sld [smem:[#allocation13_spill]] }
  0x58   : > { %346 = vmatpush1.msra.mxu0 %v274_v6  ;;  %v285_v21 = vrot.slane %v3338_v20, %v284_v19  ;;  %s4111_s4 = sld [smem:[#allocation20_spill]]  ;;  %s3976_s13 = scalar_lea.vmem [#allocation7], %s2224_s7 }
  0x59   : > { %347 = vmatprep.subr.mxu0 %v273_v7  ;;  %s4112_s18 = sld [smem:[#allocation12_spill]] }
  0x5a   : > { %348 = vmatpush1.msra.mxu0 %v272_v8  ;;  %s4113_s20 = sld [smem:[#allocation14_spill]] }
  0x5b   : > { %2227 = vmatmul.mubr.msk.f32.vlgmr.msra.gmra.mxu0 %vm292_vm0, %v264_v9 }
  0x5c   : > { %387 = vmatprep.mubr.f32.mxu0 %v3121_v0 }
  0x5d   : > { %s2340_s12 = sshll.u32 %s4110_s24, 4  ;;  %s3131_s24 = smov [#allocation7]  }
  0x5e   : > { %s3001_s30 = sshll.u32 %s3131_s24, 4  ;;  %s3002_s30 = int_to_ptr.vmem [resolvable:$false] %s3001_s30 }
  0x5f   : > { %2228 = vmatmul.mubr.msk.f32.gmra.mxu0 %vm292_vm0, %v265_v10  ;;  %s2100_s7 = sadd.s32 %s4112_s18, %s2340_s12  ;;  %s3003_s11 = scalar_lea.vmem %s3002_s30, 2048 }
  0x60   : > { %393 = vmatprep.mubr.f32.mxu0 %v3121_v0  ;;  %s2335_s1 = sshll.u32 %s4113_s20, 5 }
  0x61   : > { %s2102_s3 = sadd.s32 %s2335_s1, %s2100_s7 }
  0x63   : > { %2229 = vmatmul.mubr.msk.f32.gmra.mxu0 %vm292_vm0, %v266_v11 }
  0x64   : > { %399 = vmatprep.mubr.f32.mxu0 %v3121_v0 }
  0x67   : > { %2230 = vmatmul.mubr.msk.f32.gmra.mxu0 %vm292_vm0, %v267_v12 }
  0x68   : > { %405 = vmatprep.mubr.f32.mxu0 %v3121_v0 }
  0x6b   : > { %2231 = vmatmul.mubr.msk.f32.gmra.mxu0 %vm292_vm0, %v268_v13 }
  0x6c   : > { %411 = vmatprep.mubr.f32.mxu0 %v3121_v0 }
  0x6f   : > { %2232 = vmatmul.mubr.msk.f32.gmra.mxu0 %vm292_vm0, %v269_v14 }
  0x70   : > { %417 = vmatprep.mubr.f32.mxu0 %v3121_v0 }
  0x73   : > { %2233 = vmatmul.mubr.msk.f32.gmra.mxu0 %vm292_vm0, %v270_v15 }
  0x74   : > { %423 = vmatprep.mubr.f32.mxu0 %v3121_v0 }
  0x77   : > { %2234 = vmatmul.mubr.msk.f32.gmra.mxu0 %vm292_vm0, %v271_v16 }
 0x11b   : > { %v383_v22 = vpop.f32.mrf.mxu0 }
 0x11c   : > { %v3341_v23 = vadd.f32 %v383_v22, %v285_v21 }
 0x11d   : > { %v3343_v24 = vpop.f32.mrf.mxu0 }
 0x11e   : > { %2485 = vmatprep.mubr.msk.f32.mxu1 %vm454_vm1, %v3341_v23 }
 0x11f   : > { %v389_v25 = vpop.f32.mrf.mxu0 }
 0x120   : > { %v3375_v43 = vadd.f32 %v389_v25, %v285_v21 }
 0x121   : > { %v3347_v26 = vpop.f32.mrf.mxu0 }
 0x123   : > { %v395_v27 = vpop.f32.mrf.mxu0 }
 0x124   : > { %v3365_v40 = vadd.f32 %v395_v27, %v285_v21 }
 0x125   : > { %v3349_v28 = vpop.f32.mrf.mxu0 }
 0x127   : > { %v401_v29 = vpop.f32.mrf.mxu0 }
 0x128   : > { %v3377_v44 = vadd.f32 %v401_v29, %v285_v21 }
 0x129   : > { %v3351_v30 = vpop.f32.mrf.mxu0 }
 0x12b   : > { %v407_v31 = vpop.f32.mrf.mxu0 }
 0x12c   : > { %v3360_v37 = vadd.f32 %v407_v31, %v285_v21 }
 0x12d   : > { %v3353_v32 = vpop.f32.mrf.mxu0 }
 0x12f   : > { %v413_v33 = vpop.f32.mrf.mxu0 }
 0x130   : > { %v3355_v34 = vadd.f32 %v413_v33, %v285_v21 }
 0x131   : > { %v3357_v35 = vpop.f32.mrf.mxu0 }
 0x132   : > { %707 = vrot.lane.b32.xlu1 %v3355_v34, %s3122_s19 }
 0x133   : > { %v419_v36 = vpop.f32.mrf.mxu0 }
 0x134   : > { %v3371_v42 = vadd.f32 %v419_v36, %v285_v21 }
 0x135   : > { %v3362_v38 = vpop.f32.mrf.mxu0 }
 0x136   : > { %705 = vrot.lane.b32.xlu1 %v3360_v37, %s3122_s19 }
 0x137   : > { %v425_v39 = vpop.f32.mrf.mxu0 }
 0x138   : > { %v3367_v41 = vadd.f32 %v425_v39, %v285_v21 }
 0x139   : > { %v3477_v15 = vpop.f32.mrf.mxu0 }
 0x13a   : > { %711 = vrot.lane.b32.xlu0 %v3367_v41, %s3122_s19  ;;  %701 = vrot.lane.b32.xlu1 %v3365_v40, %s3122_s19 }
 0x13e   : > { %709 = vrot.lane.b32.xlu0 %v3371_v42, %s3122_s19  ;;  %697 = vrot.lane.b32.xlu1 %v3341_v23, %s3122_s19 }
 0x142   : > { %703 = vrot.lane.b32.xlu0 %v3377_v44, %s3122_s19  ;;  %683 = vrot.lane.b32.xlu1 %v3375_v43, %s3123_s27 }
 0x146   : > { %699 = vrot.lane.b32.xlu0 %v3375_v43, %s3122_s19  ;;  %687 = vrot.lane.b32.xlu1 %v3377_v44, %s3123_s27  ;;  %s2105_s19 = sshll.u32 %s3976_s13, 4  ;;  %s4001_s19 = int_to_ptr.vmem [resolvable:$true] %s2105_s19 }
 0x147   : > { %p3004_p12 = scmp.lt.s32.totalorder %s4001_s19, %s3002_s30 }
 0x14a   : > { %681 = vrot.lane.b32.xlu0 %v3341_v23, %s3123_s27  ;;  %691 = vrot.lane.b32.xlu1 %v3355_v34, %s3123_s27 }
 0x14e   : > { %685 = vrot.lane.b32.xlu0 %v3365_v40, %s3123_s27  ;;  %695 = vrot.lane.b32.xlu1 %v3367_v41, %s3123_s27 }
 0x152   : > { %689 = vrot.lane.b32.xlu0 %v3360_v37, %s3123_s27  ;;  %448 = vrot.lane.b32.xlu1 %v3355_v34, %s3124_s28 }
 0x156   : > { %693 = vrot.lane.b32.xlu0 %v3371_v42, %s3123_s27  ;;  %446 = vrot.lane.b32.xlu1 %v3360_v37, %s3124_s28  ;;  %s4114_s27 = sld [smem:[#allocation16_spill]] }
 0x15a   : > { %450 = vrot.lane.b32.xlu0 %v3371_v42, %s3124_s28  ;;  %442 = vrot.lane.b32.xlu1 %v3365_v40, %s3124_s28 }
 0x15c   : > { %p4116_p1 = scmp.ne.s32.totalorder %s4114_s27, 0 }
 0x15e   : > { %444 = vrot.lane.b32.xlu0 %v3377_v44, %s3124_s28  ;;  %438 = vrot.lane.b32.xlu1 %v3341_v23, %s3124_s28 }
 0x162   : > { %440 = vrot.lane.b32.xlu0 %v3375_v43, %s3124_s28  ;;  %950 = vrot.lane.b32.xlu1 %v3371_v42, %s3125_s5 }
 0x166   : > { %948 = vrot.lane.b32.xlu0 %v3355_v34, %s3125_s5  ;;  %946 = vrot.lane.b32.xlu1 %v3360_v37, %s3125_s5 }
 0x16a   : > { %944 = vrot.lane.b32.xlu0 %v3377_v44, %s3125_s5  ;;  %942 = vrot.lane.b32.xlu1 %v3365_v40, %s3125_s5 }
 0x16e   : > { %940 = vrot.lane.b32.xlu0 %v3375_v43, %s3125_s5  ;;  %938 = vrot.lane.b32.xlu1 %v3341_v23, %s3125_s5 }
 0x172   : > { %952 = vrot.lane.b32.xlu0 %v3367_v41, %s3125_s5  ;;  %1272 = vrot.lane.b32.xlu1 %v3371_v42, %s3126_s9 }
 0x176   : > { %1274 = vrot.lane.b32.xlu0 %v3367_v41, %s3126_s9  ;;  %452 = vrot.lane.b32.xlu1 %v3367_v41, %s3124_s28 }
 0x1a4   : > { %v708_v45 = vpop.permute.xlu1 %707 }
 0x1a8   : > { %v706_v46 = vpop.permute.xlu1 %705 }
 0x1ac   : > { %v712_v47 = vpop.permute.xlu0 %711  ;;  %v702_v48 = vpop.permute.xlu1 %701 }
 0x1ad   : > { %2497 = vmatprep.subr.msk.mxu0 %vm454_vm1, %v712_v47 }
 0x1ae   : > { %2498 = vmatpush3.xpose.msk.msra.mxu0 %vm454_vm1, %v712_v47 }
 0x1b0   : > { %v710_v49 = vpop.permute.xlu0 %709  ;;  %v698_v50 = vpop.permute.xlu1 %697 }
 0x1b1   : > { %2499 = vmatprep.subr.msk.mxu0 %vm454_vm1, %v710_v49 }
 0x1b2   : > { %2500 = vmatpush3.xpose.msk.msra.mxu0 %vm454_vm1, %v710_v49 }
 0x1b3   : > { %2501 = vmatprep.subr.msk.mxu0 %vm454_vm1, %v708_v45 }
 0x1b4   : > { %v704_v51 = vpop.permute.xlu0 %703  ;;  %v684_v52 = vpop.permute.xlu1 %683 }
 0x1b6   : > { %2502 = vmatpush3.xpose.msk.msra.mxu0 %vm454_vm1, %v708_v45 }
 0x1b7   : > { %2503 = vmatprep.subr.msk.mxu0 %vm454_vm1, %v706_v46 }
 0x1b8   : > { %v700_v53 = vpop.permute.xlu0 %699  ;;  %v688_v54 = vpop.permute.xlu1 %687 }
 0x1ba   : > { %2504 = vmatpush3.xpose.msk.msra.mxu0 %vm454_vm1, %v706_v46 }
 0x1bb   : > { %2505 = vmatprep.subr.msk.mxu0 %vm454_vm1, %v704_v51 }
 0x1bc   : > { %v682_v55 = vpop.permute.xlu0 %681  ;;  %v692_v56 = vpop.permute.xlu1 %691 }
 0x1bd   : > { %2513 = vmatprep.mubr.msk.f32.mxu0 %vm454_vm1, %v682_v55 }
 0x1be   : > { %2506 = vmatpush3.xpose.msk.msra.mxu0 %vm454_vm1, %v704_v51 }
 0x1bf   : > { %2507 = vmatprep.subr.msk.mxu0 %vm454_vm1, %v702_v48 }
 0x1c0   : > { %v696_v57 = vpop.permute.xlu1 %695  ;;  %v686_v60 = vpop.permute.xlu0 %685 }
 0x1c2   : > { %2508 = vmatpush3.xpose.msk.msra.mxu0 %vm454_vm1, %v702_v48 }
 0x1c3   : > { %2509 = vmatprep.subr.msk.mxu0 %vm454_vm1, %v700_v53 }
 0x1c4   : > { %v449_v58 = vpop.permute.xlu1 %448  ;;  %v690_v62 = vpop.permute.xlu0 %689 }
 0x1c6   : > { %2510 = vmatpush3.xpose.msk.msra.mxu0 %vm454_vm1, %v700_v53 }
 0x1c7   : > { %2511 = vmatprep.subr.msk.mxu0 %vm454_vm1, %v698_v50 }
 0x1c8   : > { %v447_v59 = vpop.permute.xlu1 %446  ;;  %v694_v1 = vpop.permute.xlu0 %693 }
 0x1ca   : > { %2512 = vmatpush3.xpose.msk.msra.mxu0 %vm454_vm1, %v698_v50 }
 0x1cc   : > { %v443_v61 = vpop.permute.xlu1 %442  ;;  %v451_v5 = vpop.permute.xlu0 %450 }
 0x1cd   : > { %2514 = vmatmul.mubr.msk.f32.vlgmr.msra.gmra.mxu0 %vm454_vm1, %v684_v52 }
 0x1ce   : > { %2516 = vmatprep.mubr.msk.f32.mxu0 %vm454_vm1, %v686_v60 }
 0x1d0   : > { %v439_v63 = vpop.permute.xlu1 %438  ;;  %v445_v7 = vpop.permute.xlu0 %444 }
 0x1d1   : > { %2517 = vmatmul.mubr.msk.f32.gmra.mxu0 %vm454_vm1, %v688_v54 }
 0x1d2   : > { %2519 = vmatprep.mubr.msk.f32.mxu0 %vm454_vm1, %v690_v62 }
 0x1d4   : > { %v951_v0 = vpop.permute.xlu1 %950  ;;  %v441_v9 = vpop.permute.xlu0 %440 }
 0x1d5   : > { %2520 = vmatmul.mubr.msk.f32.gmra.mxu0 %vm454_vm1, %v692_v56 }
 0x1d6   : > { %2522 = vmatprep.mubr.msk.f32.mxu0 %vm454_vm1, %v694_v1 }
 0x1d8   : > { %v947_v2 = vpop.permute.xlu1 %946  ;;  %v949_v10 = vpop.permute.xlu0 %948 }
 0x1d9   : > { %2523 = vmatmul.mubr.msk.f32.gmra.mxu0 %vm454_vm1, %v696_v57 }
 0x1dc   : > { %v943_v3 = vpop.permute.xlu1 %942  ;;  %v945_v11 = vpop.permute.xlu0 %944 }
 0x1e0   : > { %v939_v4 = vpop.permute.xlu1 %938  ;;  %v941_v12 = vpop.permute.xlu0 %940 }
 0x1e4   : > { %v3441_v6 = vpop.permute.xlu1 %1272  ;;  %v953_v13 = vpop.permute.xlu0 %952 }
 0x1e8   : > { %v453_v8 = vpop.permute.xlu1 %452  ;;  %v3473_v14 = vpop.permute.xlu0 %1274 }
 0x1e9   : > { %2469 = vmatprep.subr.msk.mxu1 %vm454_vm1, %v453_v8 }
 0x1ea   : > { %2470 = vmatpush3.xpose.msk.msra.mxu1 %vm454_vm1, %v453_v8 }
 0x1eb   : > { %2471 = vmatprep.subr.msk.mxu1 %vm454_vm1, %v451_v5 }
 0x1ee   : > { %2472 = vmatpush3.xpose.msk.msra.mxu1 %vm454_vm1, %v451_v5 }
 0x1ef   : > { %2473 = vmatprep.subr.msk.mxu1 %vm454_vm1, %v449_v58 }
 0x1f2   : > { %2474 = vmatpush3.xpose.msk.msra.mxu1 %vm454_vm1, %v449_v58 }
 0x1f3   : > { %2475 = vmatprep.subr.msk.mxu1 %vm454_vm1, %v447_v59 }
 0x1f6   : > { %2476 = vmatpush3.xpose.msk.msra.mxu1 %vm454_vm1, %v447_v59 }
 0x1f7   : > { %2477 = vmatprep.subr.msk.mxu1 %vm454_vm1, %v445_v7 }
 0x1fa   : > { %2478 = vmatpush3.xpose.msk.msra.mxu1 %vm454_vm1, %v445_v7 }
 0x1fb   : > { %2479 = vmatprep.subr.msk.mxu1 %vm454_vm1, %v443_v61 }
 0x1fe   : > { %2480 = vmatpush3.xpose.msk.msra.mxu1 %vm454_vm1, %v443_v61 }
 0x1ff   : > { %2481 = vmatprep.subr.msk.mxu1 %vm454_vm1, %v441_v9 }
 0x202   : > { %2482 = vmatpush3.xpose.msk.msra.mxu1 %vm454_vm1, %v441_v9 }
 0x203   : > { %2483 = vmatprep.subr.msk.mxu1 %vm454_vm1, %v439_v63 }
 0x206   : > { %2484 = vmatpush3.xpose.msk.msra.mxu1 %vm454_vm1, %v439_v63 }
 0x207   : > { %2525 = vmatprep.subr.mxu1 %v953_v13 }
 0x209   : > { %2486 = vmatmul.mubr.msk.f32.vlgmr.msra.gmra.mxu1 %vm454_vm1, %v3375_v43 }
 0x20a   : > { %2488 = vmatprep.mubr.msk.f32.mxu1 %vm454_vm1, %v3365_v40  ;;  %2526 = vmatpush3.msra.mxu1 %v953_v13 }
 0x20b   : > { %2527 = vmatprep.subr.mxu1 %v951_v0 }
 0x20c   : > { %2528 = vmatpush3.msra.mxu1 %v951_v0 }
 0x20d   : > { %2489 = vmatmul.mubr.msk.f32.gmra.mxu1 %vm454_vm1, %v3377_v44  ;;  %2529 = vmatprep.subr.mxu1 %v949_v10 }
 0x20e   : > { %2491 = vmatprep.mubr.msk.f32.mxu1 %vm454_vm1, %v3360_v37  ;;  %2530 = vmatpush3.msra.mxu1 %v949_v10 }
 0x20f   : > { %2531 = vmatprep.subr.mxu1 %v947_v2 }
 0x210   : > { %2532 = vmatpush3.msra.mxu1 %v947_v2 }
 0x211   : > { %2492 = vmatmul.mubr.msk.f32.gmra.mxu1 %vm454_vm1, %v3355_v34  ;;  %2533 = vmatprep.subr.mxu1 %v945_v11 }
 0x212   : > { %2494 = vmatprep.mubr.msk.f32.mxu1 %vm454_vm1, %v3371_v42  ;;  %2534 = vmatpush3.msra.mxu1 %v945_v11 }
 0x213   : > { %2535 = vmatprep.subr.mxu1 %v943_v3 }
 0x214   : > { %2536 = vmatpush3.msra.mxu1 %v943_v3 }
 0x215   : > { %2495 = vmatmul.mubr.msk.f32.gmra.mxu1 %vm454_vm1, %v3367_v41  ;;  %2537 = vmatprep.subr.mxu1 %v941_v12 }
 0x216   : > { %2538 = vmatpush3.msra.mxu1 %v941_v12 }
 0x217   : > { %2539 = vmatprep.subr.mxu1 %v939_v4 }
 0x218   : > { %2540 = vmatpush3.msra.mxu1 %v939_v4 }
 0x219   : > { %2581 = vmatprep.subr.msk.mxu1 %vm454_vm1, %v3473_v14 }
 0x28d   : > { %v2515_v16 = vpop.f32.mrf.mxu0 }
 0x28e   : > { %v853_v17 = vsel %vm592_vm2, %v2515_v16, -inf }
 0x28f   : > { %854 = vmax.xlane.f32.xlu1 %v853_v17  ;;  %v811_v19 = vpop.f32.mrf.mxu0 }
 0x290   : > { %v850_v21 = vsel %vm592_vm2, %v811_v19, -inf }
 0x291   : > { %851 = vmax.xlane.f32.xlu0 %v850_v21  ;;  %v2518_v22 = vpop.f32.mrf.mxu0 }
 0x292   : > { %v859_v27 = vsel %vm592_vm2, %v2518_v22, -inf }
 0x293   : > { %v821_v25 = vpop.f32.mrf.mxu0 }
 0x294   : > { %v856_v33 = vsel %vm592_vm2, %v821_v25, -inf }
 0x295   : > { %860 = vmax.xlane.f32.xlu0 %v859_v27  ;;  %v2521_v29 = vpop.f32.mrf.mxu0 }
 0x296   : > { %v865_v46 = vsel %vm592_vm2, %v2521_v29, -inf }
 0x297   : > { %v831_v31 = vpop.f32.mrf.mxu0 }
 0x298   : > { %v862_v36 = vsel %vm592_vm2, %v831_v31, -inf }
 0x299   : > { %857 = vmax.xlane.f32.xlu0 %v856_v33  ;;  %863 = vmax.xlane.f32.xlu1 %v862_v36  ;;  %v2524_v39 = vpop.f32.mrf.mxu0 }
 0x29a   : > { %v871_v48 = vsel %vm592_vm2, %v2524_v39, -inf }
 0x29b   : > { %v841_v45 = vpop.f32.mrf.mxu0 }
 0x29c   : > { %v868_v47 = vsel %vm592_vm2, %v841_v45, -inf }
 0x29d   : > { %866 = vmax.xlane.f32.xlu0 %v865_v46  ;;  %869 = vmax.xlane.f32.xlu1 %v868_v47 }
 0x2a1   : > { %872 = vmax.xlane.f32.xlu0 %v871_v48 }
 0x2ae   : > { %1268 = vrot.lane.b32.xlu1 %v3360_v37, %s3126_s9 }
 0x2b7   : > { %1270 = vrot.lane.b32.xlu0 %v3355_v34, %s3126_s9 }
 0x318   : > { %v855_v49 = vpop.xlane.xlu1 %854 }
 0x319   : > { %v875_v50 = vsub.f32 %v2515_v16, %v855_v49 }
 0x31a   : > { %v852_v51 = vpop.xlane.xlu0 %851 }
 0x31b   : > { %v884_v52 = vmul.f32 1.442695, %v875_v50  ;;  %v874_v53 = vsub.f32 %v811_v19, %v852_v51 }
 0x31d   : > { %2815 = vpow2.f32 %v884_v52  ;;  %v882_v54 = vmul.f32 1.442695, %v874_v53 }
 0x31e   : > { %v861_v59 = vpop.xlane.xlu0 %860 }
 0x31f   : > { %2817 = vpow2.f32 %v882_v54  ;;  %v877_v62 = vsub.f32 %v2518_v22, %v861_v59 }
 0x321   : > { %v888_v1 = vmul.f32 1.442695, %v877_v62 }
 0x322   : > { %v858_v60 = vpop.xlane.xlu0 %857  ;;  %v864_v63 = vpop.xlane.xlu1 %863 }
 0x323   : > { %v876_v0 = vsub.f32 %v821_v25, %v858_v60  ;;  %v878_v5 = vsub.f32 %v831_v31, %v864_v63  ;;  %2819 = vpow2.f32 %v888_v1 }
 0x325   : > { %v886_v4 = vmul.f32 1.442695, %v876_v0  ;;  %v890_v10 = vmul.f32 1.442695, %v878_v5 }
 0x326   : > { %v867_v61 = vpop.xlane.xlu0 %866  ;;  %v870_v7 = vpop.xlane.xlu1 %869 }
 0x327   : > { %v879_v2 = vsub.f32 %v2521_v29, %v867_v61  ;;  %2821 = vpow2.f32 %v886_v4  ;;  %v880_v11 = vsub.f32 %v841_v45, %v870_v7  ;;  %v3539_v45 = vpop.f32.mrf.mxu1 }
 0x328   : > { %v596_v51 = vsel %vm592_vm2, %v3539_v45, -inf }
 0x329   : > { %v892_v8 = vmul.f32 1.442695, %v879_v2  ;;  %v894_v13 = vmul.f32 1.442695, %v880_v11  ;;  %v3541_v46 = vpop.f32.mrf.mxu1 }
 0x32a   : > { %v3491_v55 = vpop.eup %2815  ;;  %v873_v3 = vpop.xlane.xlu0 %872  ;;  %v593_v53 = vsel %vm592_vm2, %v3541_v46, -inf }
 0x32b   : > { %v901_v56 = vsel %vm592_vm2, %v3491_v55, 0.0  ;;  %v881_v9 = vsub.f32 %v2524_v39, %v873_v3  ;;  %2823 = vpow2.f32 %v892_v8  ;;  %v3543_v47 = vpop.f32.mrf.mxu1  ;;  %v1269_v54 = vpop.permute.xlu1 %1268 }
 0x32c   : > { %v3495_v57 = vpop.eup %2817  ;;  %902 = vadd.xlane.f32.xlu1 %v901_v56  ;;  %2825 = vpow2.f32 %v890_v10  ;;  %v602_v0 = vsel %vm592_vm2, %v3543_v47, -inf }
 0x32d   : > { %v898_v58 = vsel %vm592_vm2, %v3495_v57, 0.0  ;;  %v896_v12 = vmul.f32 1.442695, %v881_v9  ;;  %v3545_v48 = vpop.f32.mrf.mxu1 }
 0x32e   : > { %899 = vadd.xlane.f32.xlu0 %v898_v58  ;;  %v1271_v59 = vpop.permute.xlu0 %1270  ;;  %v599_v60 = vsel %vm592_vm2, %v3545_v48, -inf }
 0x32f   : > { %2827 = vpow2.f32 %v896_v12  ;;  %v3547_v49 = vpop.f32.mrf.mxu1 }
 0x330   : > { %2829 = vpow2.f32 %v894_v13  ;;  %v3503_v16 = vpop.eup %2819  ;;  %v608_v1 = vsel %vm592_vm2, %v3547_v49, -inf }
 0x331   : > { %v907_v19 = vsel %vm592_vm2, %v3503_v16, 0.0  ;;  %v3549_v50 = vpop.f32.mrf.mxu1 }
 0x332   : > { %v605_v56 = vsel %vm592_vm2, %v3549_v50, -inf }
 0x333   : > { %v3553_v52 = vpop.f32.mrf.mxu1 }
 0x334   : > { %v3505_v17 = vpop.eup %2821  ;;  %v614_v2 = vsel %vm592_vm2, %v3553_v52, -inf }
 0x335   : > { %v904_v22 = vsel %vm592_vm2, %v3505_v17, 0.0  ;;  %v3559_v58 = vpop.f32.mrf.mxu1 }
 0x336   : > { %v611_v62 = vsel %vm592_vm2, %v3559_v58, -inf }
 0x338   : > { %v3509_v21 = vpop.eup %2823 }
 0x339   : > { %v3513_v25 = vpop.eup %2825  ;;  %v913_v27 = vsel %vm592_vm2, %v3509_v21, 0.0 }
 0x33a   : > { %v910_v31 = vsel %vm592_vm2, %v3513_v25, 0.0 }
 0x33c   : > { %v3517_v29 = vpop.eup %2827 }
 0x33d   : > { %1264 = vrot.lane.b32.xlu1 %v3365_v40, %s3126_s9  ;;  %v3521_v33 = vpop.eup %2829  ;;  %v919_v36 = vsel %vm592_vm2, %v3517_v29, 0.0 }
 0x33e   : > { %v916_v39 = vsel %vm592_vm2, %v3521_v33, 0.0 }
 0x344   : > { %1266 = vrot.lane.b32.xlu0 %v3377_v44, %s3126_s9 }
 0x361   : > { %908 = vadd.xlane.f32.xlu1 %v907_v19 }
 0x363   : > { %905 = vadd.xlane.f32.xlu0 %v904_v22 }
 0x365   : > { %914 = vadd.xlane.f32.xlu1 %v913_v27 }
 0x367   : > { %911 = vadd.xlane.f32.xlu0 %v910_v31 }
 0x369   : > { %920 = vadd.xlane.f32.xlu1 %v919_v36 }
 0x36b   : > { %917 = vadd.xlane.f32.xlu0 %v916_v39 }
 0x37a   : > { %1260 = vrot.lane.b32.xlu1 %v3341_v23, %s3126_s9 }
 0x37e   : > { %1246 = vrot.lane.b32.xlu1 %v3375_v43, %s3127_s25 }
 0x381   : > { %1262 = vrot.lane.b32.xlu0 %v3375_v43, %s3126_s9 }
 0x382   : > { %1250 = vrot.lane.b32.xlu1 %v3377_v44, %s3127_s25 }
 0x385   : > { %1244 = vrot.lane.b32.xlu0 %v3341_v23, %s3127_s25 }
 0x386   : > { %1254 = vrot.lane.b32.xlu1 %v3355_v34, %s3127_s25 }
 0x389   : > { %1248 = vrot.lane.b32.xlu0 %v3365_v40, %s3127_s25 }
 0x38a   : > { %1258 = vrot.lane.b32.xlu1 %v3367_v41, %s3127_s25 }
 0x38d   : > { %1252 = vrot.lane.b32.xlu0 %v3360_v37, %s3127_s25 }
 0x391   : > { %1256 = vrot.lane.b32.xlu0 %v3371_v42, %s3127_s25  ;;  %s4115_s25 = sld [smem:[#allocation21_spill]] }
 0x3ae   : > { %597 = vmax.xlane.f32.xlu1 %v596_v51 }
 0x3b0   : > { %594 = vmax.xlane.f32.xlu0 %v593_v53 }
 0x3b2   : > { %606 = vmax.xlane.f32.xlu1 %v605_v56 }
 0x3b4   : > { %600 = vmax.xlane.f32.xlu0 %v599_v60 }
 0x3b5   : > { %v903_v61 = vpop.xlane.xlu1 %902 }
 0x3b6   : > { %612 = vmax.xlane.f32.xlu1 %v611_v62  ;;  %2831 = vrcp.f32 %v903_v61 }
 0x3b7   : > { %v900_v63 = vpop.xlane.xlu0 %899 }
 0x3b8   : > { %2833 = vrcp.f32 %v900_v63  ;;  %603 = vmax.xlane.f32.xlu0 %v602_v0 }
 0x3bc   : > { %609 = vmax.xlane.f32.xlu0 %v608_v1 }
 0x3c0   : > { %615 = vmax.xlane.f32.xlu0 %v614_v2 }
 0x3c3   : > { %v2832_v3 = vpop.eup %2831 }
 0x3c4   : > { %v931_v7 = vmul.f32 %v2832_v3, %v3491_v55  ;;  %v1267_v55 = vpop.permute.xlu0 %1266 }
 0x3c5   : > { %v2834_v4 = vpop.eup %2833 }
 0x3c6   : > { %v930_v5 = vmul.f32 %v2834_v4, %v3495_v57  ;;  %v1265_v57 = vpop.permute.xlu1 %1264 }
 0x3c8   : > { %2541 = vmatprep.mubr.msk.f32.mxu1 %vm592_vm2, %v930_v5 }
 0x3c9   : > { %2542 = vmatmul.mubr.msk.f32.vlgmr.msra.gmra.mxu1 %vm592_vm2, %v931_v7 }
 0x3ca   : > { %2582 = vmatpush3.xpose.msk.msra.mxu1 %vm454_vm1, %v3473_v14 }
 0x3cb   : > { %2583 = vmatprep.subr.msk.mxu1 %vm454_vm1, %v3441_v6 }
 0x3ce   : > { %2584 = vmatpush3.xpose.msk.msra.mxu1 %vm454_vm1, %v3441_v6 }
 0x3cf   : > { %2585 = vmatprep.subr.msk.mxu1 %vm454_vm1, %v1271_v59 }
 0x3d2   : > { %2586 = vmatpush3.xpose.msk.msra.mxu1 %vm454_vm1, %v1271_v59 }
 0x3d3   : > { %2587 = vmatprep.subr.msk.mxu1 %vm454_vm1, %v1269_v54 }
 0x3d6   : > { %2588 = vmatpush3.xpose.msk.msra.mxu1 %vm454_vm1, %v1269_v54 }
 0x3d7   : > { %2589 = vmatprep.subr.msk.mxu1 %vm454_vm1, %v1267_v55 }
 0x3da   : > { %2590 = vmatpush3.xpose.msk.msra.mxu1 %vm454_vm1, %v1267_v55 }
 0x3db   : > { %2591 = vmatprep.subr.msk.mxu1 %vm454_vm1, %v1265_v57 }
 0x3de   : > { %2592 = vmatpush3.xpose.msk.msra.mxu1 %vm454_vm1, %v1265_v57 }
 0x3ea   : > { %v909_v14 = vpop.xlane.xlu1 %908 }
 0x3eb   : > { %2835 = vrcp.f32 %v909_v14 }
 0x3ec   : > { %v906_v6 = vpop.xlane.xlu0 %905 }
 0x3ed   : > { %2837 = vrcp.f32 %v906_v6 }
 0x3ee   : > { %v915_v8 = vpop.xlane.xlu1 %914 }
 0x3ef   : > { %2839 = vrcp.f32 %v915_v8 }
 0x3f0   : > { %v912_v9 = vpop.xlane.xlu0 %911 }
 0x3f1   : > { %2841 = vrcp.f32 %v912_v9 }
 0x3f2   : > { %v921_v10 = vpop.xlane.xlu1 %920 }
 0x3f3   : > { %2843 = vrcp.f32 %v921_v10 }
 0x3f4   : > { %v918_v11 = vpop.xlane.xlu0 %917 }
 0x3f5   : > { %2845 = vrcp.f32 %v918_v11 }
 0x3f6   : > { %v1261_v22 = vpop.permute.xlu1 %1260 }
 0x3f8   : > { %v1263_v12 = vpop.permute.xlu0 %1262  ;;  %v2836_v13 = vpop.eup %2835 }
 0x3f9   : > { %2593 = vmatprep.subr.msk.mxu1 %vm454_vm1, %v1263_v12  ;;  %v933_v31 = vmul.f32 %v2836_v13, %v3503_v16 }
 0x3fa   : > { %v2838_v19 = vpop.eup %2837  ;;  %2594 = vmatpush3.xpose.msk.msra.mxu1 %vm454_vm1, %v1263_v12  ;;  %v1247_v16 = vpop.permute.xlu1 %1246 }
 0x3fb   : > { %2595 = vmatprep.subr.msk.mxu1 %vm454_vm1, %v1261_v22  ;;  %v932_v27 = vmul.f32 %v2838_v19, %v3505_v17 }
 0x3fc   : > { %v2840_v36 = vpop.eup %2839  ;;  %v1245_v53 = vpop.permute.xlu0 %1244 }
 0x3fd   : > { %2544 = vmatprep.mubr.msk.f32.mxu1 %vm592_vm2, %v932_v27  ;;  %v935_v54 = vmul.f32 %v2840_v36, %v3509_v21 }
 0x3fe   : > { %v2842_v39 = vpop.eup %2841  ;;  %2545 = vmatmul.mubr.msk.f32.gmra.mxu1 %vm592_vm2, %v933_v31 }
 0x3ff   : > { %2596 = vmatpush3.xpose.msk.msra.mxu1 %vm454_vm1, %v1261_v22  ;;  %v934_v51 = vmul.f32 %v2842_v39, %v3513_v25  ;;  %v1251_v25 = vpop.permute.xlu1 %1250 }
 0x400   : > { %v2844_v56 = vpop.eup %2843  ;;  %v1249_v61 = vpop.permute.xlu0 %1248 }
 0x401   : > { %2547 = vmatprep.mubr.msk.f32.mxu1 %vm592_vm2, %v934_v51  ;;  %v937_v60 = vmul.f32 %v2844_v56, %v3517_v29 }
 0x402   : > { %v2846_v59 = vpop.eup %2845  ;;  %2548 = vmatmul.mubr.msk.f32.gmra.mxu1 %vm592_vm2, %v935_v54 }
 0x403   : > { %v936_v17 = vmul.f32 %v2846_v59, %v3521_v33  ;;  %v1255_v62 = vpop.permute.xlu1 %1254 }
 0x404   : > { %v1253_v21 = vpop.permute.xlu0 %1252 }
 0x405   : > { %2550 = vmatprep.mubr.msk.f32.mxu1 %vm592_vm2, %v936_v17 }
 0x406   : > { %2551 = vmatmul.mubr.msk.f32.gmra.mxu1 %vm592_vm2, %v937_v60 }
 0x407   : > { %2597 = vmatprep.mubr.msk.f32.mxu1 %vm454_vm1, %v1245_v53  ;;  %v1259_v29 = vpop.permute.xlu1 %1258 }
 0x408   : > { %v1257_v33 = vpop.permute.xlu0 %1256 }
 0x40a   : > { %2598 = vmatmul.mubr.msk.f32.vlgmr.msra.gmra.mxu1 %vm454_vm1, %v1247_v16 }
 0x40b   : > { %2600 = vmatprep.mubr.msk.f32.mxu1 %vm454_vm1, %v1249_v61 }
 0x40e   : > { %2601 = vmatmul.mubr.msk.f32.gmra.mxu1 %vm454_vm1, %v1251_v25 }
 0x40f   : > { %2603 = vmatprep.mubr.msk.f32.mxu1 %vm454_vm1, %v1253_v21 }
 0x412   : > { %2604 = vmatmul.mubr.msk.f32.gmra.mxu1 %vm454_vm1, %v1255_v62 }
 0x413   : > { %2606 = vmatprep.mubr.msk.f32.mxu1 %vm454_vm1, %v1257_v33 }
 0x416   : > { %2607 = vmatmul.mubr.msk.f32.gmra.mxu1 %vm454_vm1, %v1259_v29 }
 0x437   : > { %v598_v63 = vpop.xlane.xlu1 %597 }
 0x438   : > { %v618_v0 = vsub.f32 %v3539_v45, %v598_v63 }
 0x439   : > { %v595_v1 = vpop.xlane.xlu0 %594 }
 0x43a   : > { %v627_v2 = vmul.f32 1.442695, %v618_v0  ;;  %v617_v3 = vsub.f32 %v3541_v46, %v595_v1 }
 0x43b   : > { %v607_v4 = vpop.xlane.xlu1 %606 }
 0x43c   : > { %2847 = vpow2.f32 %v627_v2  ;;  %v625_v5 = vmul.f32 1.442695, %v617_v3  ;;  %v621_v7 = vsub.f32 %v3549_v50, %v607_v4 }
 0x43d   : > { %v601_v55 = vpop.xlane.xlu0 %600 }
 0x43e   : > { %2849 = vpow2.f32 %v625_v5  ;;  %v619_v57 = vsub.f32 %v3545_v48, %v601_v55  ;;  %v633_v14 = vmul.f32 1.442695, %v621_v7 }
 0x43f   : > { %v613_v59 = vpop.xlane.xlu1 %612 }
 0x440   : > { %v629_v6 = vmul.f32 1.442695, %v619_v57  ;;  %v623_v16 = vsub.f32 %v3559_v58, %v613_v59 }
 0x441   : > { %v604_v8 = vpop.xlane.xlu0 %603 }
 0x442   : > { %2851 = vpow2.f32 %v629_v6  ;;  %v620_v9 = vsub.f32 %v3543_v47, %v604_v8  ;;  %v637_v17 = vmul.f32 1.442695, %v623_v16 }
 0x443   : > { %2853 = vpow2.f32 %v633_v14 }
 0x444   : > { %v631_v45 = vmul.f32 1.442695, %v620_v9 }
 0x445   : > { %v610_v10 = vpop.xlane.xlu0 %609 }
 0x446   : > { %2855 = vpow2.f32 %v631_v45  ;;  %v622_v46 = vsub.f32 %v3547_v49, %v610_v10 }
 0x448   : > { %v635_v11 = vmul.f32 1.442695, %v622_v46 }
 0x449   : > { %v3619_v12 = vpop.eup %2847  ;;  %v616_v50 = vpop.xlane.xlu0 %615 }
 0x44a   : > { %2857 = vpow2.f32 %v635_v11  ;;  %v624_v13 = vsub.f32 %v3553_v52, %v616_v50  ;;  %v644_v48 = vsel %vm592_vm2, %v3619_v12, 0.0 }
 0x44b   : > { %v3624_v19 = vpop.eup %2849  ;;  %645 = vadd.xlane.f32.xlu0 %v644_v48 }
 0x44c   : > { %v639_v47 = vmul.f32 1.442695, %v624_v13  ;;  %v641_v22 = vsel %vm592_vm2, %v3624_v19, 0.0 }
 0x44d   : > { %642 = vadd.xlane.f32.xlu1 %v641_v22 }
 0x44e   : > { %2859 = vpow2.f32 %v639_v47 }
 0x44f   : > { %v3628_v49 = vpop.eup %2851  ;;  %2861 = vpow2.f32 %v637_v17 }
 0x450   : > { %v647_v27 = vsel %vm592_vm2, %v3628_v49, 0.0  ;;  %v3632_v31 = vpop.eup %2853 }
 0x451   : > { %648 = vadd.xlane.f32.xlu1 %v647_v27  ;;  %v653_v39 = vsel %vm592_vm2, %v3632_v31, 0.0 }
 0x453   : > { %v3634_v52 = vpop.eup %2855 }
 0x454   : > { %v650_v36 = vsel %vm592_vm2, %v3634_v52, 0.0 }
 0x455   : > { %651 = vadd.xlane.f32.xlu0 %v650_v36  ;;  %654 = vadd.xlane.f32.xlu1 %v653_v39 }
 0x457   : > { %v3640_v51 = vpop.eup %2857 }
 0x458   : > { %v656_v53 = vsel %vm592_vm2, %v3640_v51, 0.0 }
 0x459   : > { %657 = vadd.xlane.f32.xlu0 %v656_v53 }
 0x45b   : > { %v3644_v54 = vpop.eup %2859 }
 0x45c   : > { %v662_v56 = vsel %vm592_vm2, %v3644_v54, 0.0  ;;  %v3665_v60 = vpop.eup %2861 }
 0x45d   : > { %663 = vadd.xlane.f32.xlu1 %v662_v56  ;;  %v659_v61 = vsel %vm592_vm2, %v3665_v60, 0.0 }
 0x46e   : > { %1103 = vrot.lane.b32.xlu1 %v3371_v42, %s3128_s14 }
 0x46f   : > { %1105 = vrot.lane.b32.xlu0 %v3367_v41, %s3128_s14 }
 0x472   : > { %1097 = vrot.lane.b32.xlu1 %v3377_v44, %s3128_s14 }
 0x473   : > { %1101 = vrot.lane.b32.xlu0 %v3355_v34, %s3128_s14 }
 0x476   : > { %1095 = vrot.lane.b32.xlu1 %v3365_v40, %s3128_s14 }
 0x477   : > { %1099 = vrot.lane.b32.xlu0 %v3360_v37, %s3128_s14 }
 0x47a   : > { %1091 = vrot.lane.b32.xlu1 %v3341_v23, %s3128_s14 }
 0x47b   : > { %1093 = vrot.lane.b32.xlu0 %v3375_v43, %s3128_s14 }
 0x47e   : > { %1668 = vrot.lane.b32.xlu1 %v3367_v41, %s3129_s8 }
 0x47f   : > { %1666 = vrot.lane.b32.xlu0 %v3371_v42, %s3129_s8 }
 0x482   : > { %1664 = vrot.lane.b32.xlu1 %v3355_v34, %s3129_s8 }
 0x486   : > { %1662 = vrot.lane.b32.xlu1 %v3360_v37, %s3129_s8 }
 0x489   : > { %v3669_v25 = vpop.f32.mrf.mxu1 }
 0x48b   : > { %v3671_v21 = vpop.f32.mrf.mxu1 }
 0x4aa   : > { %660 = vadd.xlane.f32.xlu1 %v659_v61  ;;  %v288_v61 = vsub.s32 1, %v3332_v18 }
 0x4be   : > { %v3673_v62 = vpop.f32.mrf.mxu1 }
 0x4c0   : > { %v3675_v33 = vpop.f32.mrf.mxu1 }
 0x4c2   : > { %v3677_v29 = vpop.f32.mrf.mxu1 }
 0x4c4   : > { %v3679_v63 = vpop.f32.mrf.mxu1 }
 0x4c6   : > { %v3681_v58 = vpop.f32.mrf.mxu1 }
 0x4c8   : > { %v3683_v0 = vpop.f32.mrf.mxu1 }
 0x4ca   : > { %v3685_v1 = vpop.f32.mrf.mxu1 }
 0x4cb   : > { %v1416_v2 = vsel %vm592_vm2, %v3685_v1, -inf }
 0x4cc   : > { %1417 = vmax.xlane.f32.xlu0 %v1416_v2  ;;  %v3689_v3 = vpop.f32.mrf.mxu1 }
 0x4cd   : > { %v1413_v4 = vsel %vm592_vm2, %v3689_v3, -inf }
 0x4ce   : > { %v3693_v5 = vpop.f32.mrf.mxu1  ;;  %1414 = vmax.xlane.f32.xlu1 %v1413_v4 }
 0x4cf   : > { %v1422_v7 = vsel %vm592_vm2, %v3693_v5, -inf }
 0x4d0   : > { %1423 = vmax.xlane.f32.xlu0 %v1422_v7  ;;  %v3697_v55 = vpop.f32.mrf.mxu1 }
 0x4d1   : > { %v1419_v57 = vsel %vm592_vm2, %v3697_v55, -inf }
 0x4d2   : > { %v3701_v14 = vpop.f32.mrf.mxu1  ;;  %1420 = vmax.xlane.f32.xlu1 %v1419_v57 }
 0x4d3   : > { %v1428_v6 = vsel %vm592_vm2, %v3701_v14, -inf }
 0x4d4   : > { %1429 = vmax.xlane.f32.xlu0 %v1428_v6  ;;  %v3705_v8 = vpop.f32.mrf.mxu1  ;;  %v646_v13 = vpop.xlane.xlu0 %645  ;;  %v289_v6 = vrot.slane %v3338_v20, %v288_v61 }
 0x4d5   : > { %v1425_v9 = vsel %vm592_vm2, %v3705_v8, -inf }
 0x4d6   : > { %v3709_v45 = vpop.f32.mrf.mxu1  ;;  %1426 = vmax.xlane.f32.xlu1 %v1425_v9  ;;  %v643_v10 = vpop.xlane.xlu1 %642  ;;  %v3740_v20 = vadd.f32 %v3357_v35, %v289_v6  ;;  %v3754_v35 = vadd.f32 %v3351_v30, %v289_v6  ;;  %v3771_v30 = vadd.f32 %v3343_v24, %v289_v6 }
 0x4d7   : > { %2863 = vrcp.f32 %v643_v10  ;;  %v1434_v46 = vsel %vm592_vm2, %v3709_v45, -inf  ;;  %v3728_v10 = vadd.f32 %v3477_v15, %v289_v6 }
 0x4d8   : > { %1435 = vmax.xlane.f32.xlu0 %v1434_v46  ;;  %v3713_v11 = vpop.f32.mrf.mxu1  ;;  %2865 = vrcp.f32 %v646_v13 }
 0x4d9   : > { %v1431_v50 = vsel %vm592_vm2, %v3713_v11, -inf }
 0x4da   : > { %1432 = vmax.xlane.f32.xlu1 %v1431_v50  ;;  %v649_v48 = vpop.xlane.xlu1 %648 }
 0x4db   : > { %2867 = vrcp.f32 %v649_v48  ;;  %v3733_v48 = vadd.f32 %v3362_v38, %v289_v6 }
 0x4de   : > { %v652_v47 = vpop.xlane.xlu0 %651  ;;  %v655_v22 = vpop.xlane.xlu1 %654 }
 0x4df   : > { %2869 = vrcp.f32 %v652_v47 }
 0x4e0   : > { %2871 = vrcp.f32 %v655_v22 }
 0x4e2   : > { %v658_v27 = vpop.xlane.xlu0 %657 }
 0x4e3   : > { %2873 = vrcp.f32 %v658_v27 }
 0x4e4   : > { %v2864_v36 = vpop.eup %2863 }
 0x4e5   : > { %v673_v39 = vmul.f32 %v2864_v36, %v3624_v19  ;;  %v2866_v4 = vpop.eup %2865 }
 0x4e6   : > { %v1106_v53 = vpop.permute.xlu0 %1105  ;;  %v3718_v56 = vpop.xlane.xlu1 %663  ;;  %v674_v46 = vmul.f32 %v2866_v4, %v3619_v12 }
 0x4e7   : > { %2553 = vmatprep.subr.mxu0 %v1106_v53  ;;  %2569 = vmatprep.mubr.msk.f32.mxu0 %vm592_vm2, %v673_v39  ;;  %2875 = vrcp.f32 %v3718_v56 }
 0x4e8   : > { %2554 = vmatpush3.msra.mxu0 %v1106_v53  ;;  %v2868_v57 = vpop.eup %2867 }
 0x4e9   : > { %v675_v50 = vmul.f32 %v2868_v57, %v3628_v49  ;;  %v3747_v49 = vadd.f32 %v3353_v32, %v289_v6  ;;  %v3760_v32 = vadd.f32 %v3349_v28, %v289_v6 }
 0x4ea   : > { %v1102_v59 = vpop.permute.xlu0 %1101  ;;  %v1104_v16 = vpop.permute.xlu1 %1103 }
 0x4eb   : > { %1658 = vrot.lane.b32.xlu1 %v3365_v40, %s3129_s8  ;;  %2555 = vmatprep.subr.mxu0 %v1104_v16 }
 0x4ec   : > { %2556 = vmatpush3.msra.mxu0 %v1104_v16  ;;  %v2870_v18 = vpop.eup %2869 }
 0x4ed   : > { %2557 = vmatprep.subr.mxu0 %v1102_v59  ;;  %v2872_v13 = vpop.eup %2871  ;;  %v676_v15 = vmul.f32 %v2870_v18, %v3634_v52 }
 0x4ee   : > { %v1100_v19 = vpop.permute.xlu0 %1099  ;;  %1660 = vrot.lane.b32.xlu0 %v3377_v44, %s3129_s8  ;;  %2558 = vmatpush3.msra.mxu0 %v1102_v59  ;;  %v1098_v17 = vpop.permute.xlu1 %1097  ;;  %v677_v38 = vmul.f32 %v2872_v13, %v3632_v31  ;;  %v3766_v31 = vadd.f32 %v3347_v26, %v289_v6 }
 0x4ef   : > { %2559 = vmatprep.subr.mxu0 %v1100_v19 }
 0x4f0   : > { %2560 = vmatpush3.msra.mxu0 %v1100_v19  ;;  %v2874_v12 = vpop.eup %2873 }
 0x4f1   : > { %2561 = vmatprep.subr.mxu0 %v1098_v17  ;;  %v678_v52 = vmul.f32 %v2874_v12, %v3640_v51 }
 0x4f2   : > { %2562 = vmatpush3.msra.mxu0 %v1098_v17  ;;  %v1096_v2 = vpop.permute.xlu1 %1095  ;;  %v1094_v7 = vpop.permute.xlu0 %1093 }
 0x4f3   : > { %2563 = vmatprep.subr.mxu0 %v1096_v2 }
 0x4f4   : > { %2564 = vmatpush3.msra.mxu0 %v1096_v2  ;;  %v2876_v47 = vpop.eup %2875 }
 0x4f5   : > { %2565 = vmatprep.subr.mxu0 %v1094_v7  ;;  %v680_v36 = vmul.f32 %v2876_v47, %v3644_v54 }
 0x4f6   : > { %2566 = vmatpush3.msra.mxu0 %v1094_v7  ;;  %v1092_v9 = vpop.permute.xlu1 %1091  ;;  %v3790_v39 = vpop.permute.xlu0 %1666 }
 0x4f7   : > { %2567 = vmatprep.subr.mxu0 %v1092_v9 }
 0x4f8   : > { %2568 = vmatpush3.msra.mxu0 %v1092_v9 }
 0x4f9   : > { %2570 = vmatmul.mubr.msk.f32.vlgmr.msra.gmra.mxu0 %vm592_vm2, %v674_v46  ;;  %2609 = vmatprep.subr.mxu0 %v3728_v10 }
 0x4fa   : > { %2572 = vmatprep.mubr.msk.f32.mxu0 %vm592_vm2, %v675_v50  ;;  %2610 = vmatpush3.msra.mxu0 %v3728_v10  ;;  %v3776_v28 = vpop.permute.xlu1 %1668 }
 0x4fb   : > { %2611 = vmatprep.subr.mxu0 %v3733_v48 }
 0x4fc   : > { %2612 = vmatpush3.msra.mxu0 %v3733_v48 }
 0x4fd   : > { %2573 = vmatmul.mubr.msk.f32.gmra.mxu0 %vm592_vm2, %v676_v15  ;;  %2613 = vmatprep.subr.mxu0 %v3740_v20 }
 0x4fe   : > { %2575 = vmatprep.mubr.msk.f32.mxu0 %vm592_vm2, %v677_v38  ;;  %2614 = vmatpush3.msra.mxu0 %v3740_v20  ;;  %v3781_v26 = vpop.permute.xlu1 %1664 }
 0x4ff   : > { %2615 = vmatprep.subr.mxu0 %v3747_v49 }
 0x500   : > { %2616 = vmatpush3.msra.mxu0 %v3747_v49 }
 0x501   : > { %2576 = vmatmul.mubr.msk.f32.gmra.mxu0 %vm592_vm2, %v678_v52  ;;  %2617 = vmatprep.subr.mxu0 %v3754_v35 }
 0x502   : > { %2618 = vmatpush3.msra.mxu0 %v3754_v35  ;;  %v3783_v51 = vpop.permute.xlu1 %1662 }
 0x503   : > { %2619 = vmatprep.subr.mxu0 %v3760_v32 }
 0x504   : > { %2620 = vmatpush3.msra.mxu0 %v3760_v32 }
 0x505   : > { %2621 = vmatprep.subr.mxu0 %v3766_v31 }
 0x506   : > { %2622 = vmatpush3.msra.mxu0 %v3766_v31 }
 0x507   : > { %2623 = vmatprep.subr.mxu0 %v3771_v30 }
 0x508   : > { %2624 = vmatpush3.msra.mxu0 %v3771_v30 }
 0x509   : > { %2637 = vmatprep.subr.msk.mxu0 %vm454_vm1, %v3776_v28 }
 0x533   : > { %v661_v24 = vpop.xlane.xlu1 %660 }
 0x534   : > { %2877 = vrcp.f32 %v661_v24 }
 0x541   : > { %v2878_v22 = vpop.eup %2877 }
 0x542   : > { %v679_v27 = vmul.f32 %v2878_v22, %v3665_v60 }
 0x544   : > { %2578 = vmatprep.mubr.msk.f32.mxu0 %vm592_vm2, %v679_v27 }
 0x545   : > { %2579 = vmatmul.mubr.msk.f32.gmra.mxu0 %vm592_vm2, %v680_v36 }
 0x555   : > { %v1418_v53 = vpop.xlane.xlu0 %1417 }
 0x556   : > { %v1438_v59 = vsub.f32 %v3685_v1, %v1418_v53 }
 0x557   : > { %v1415_v16 = vpop.xlane.xlu1 %1414 }
 0x558   : > { %v1447_v19 = vmul.f32 1.442695, %v1438_v59  ;;  %v1437_v56 = vsub.f32 %v3689_v3, %v1415_v16 }
 0x559   : > { %v1424_v17 = vpop.xlane.xlu0 %1423 }
 0x55a   : > { %2879 = vpow2.f32 %v1447_v19  ;;  %v1445_v61 = vmul.f32 1.442695, %v1437_v56  ;;  %v1440_v60 = vsub.f32 %v3693_v5, %v1424_v17 }
 0x55b   : > { %v1421_v2 = vpop.xlane.xlu1 %1420 }
 0x55c   : > { %2881 = vpow2.f32 %v1445_v61  ;;  %v1451_v54 = vmul.f32 1.442695, %v1440_v60  ;;  %v1439_v4 = vsub.f32 %v3697_v55, %v1421_v2 }
 0x55d   : > { %v1430_v7 = vpop.xlane.xlu0 %1429 }
 0x55e   : > { %2883 = vpow2.f32 %v1451_v54  ;;  %v1449_v57 = vmul.f32 1.442695, %v1439_v4  ;;  %v1442_v6 = vsub.f32 %v3701_v14, %v1430_v7 }
 0x55f   : > { %v1427_v1 = vpop.xlane.xlu1 %1426 }
 0x560   : > { %2885 = vpow2.f32 %v1449_v57  ;;  %v1455_v9 = vmul.f32 1.442695, %v1442_v6  ;;  %v1441_v3 = vsub.f32 %v3705_v8, %v1427_v1 }
 0x561   : > { %v1436_v36 = vpop.xlane.xlu0 %1435 }
 0x562   : > { %2887 = vpow2.f32 %v1455_v9  ;;  %v1453_v46 = vmul.f32 1.442695, %v1441_v3  ;;  %v1444_v53 = vsub.f32 %v3709_v45, %v1436_v36 }
 0x563   : > { %v1433_v47 = vpop.xlane.xlu1 %1432 }
 0x564   : > { %2889 = vpow2.f32 %v1453_v46  ;;  %v1443_v22 = vsub.f32 %v3713_v11, %v1433_v47  ;;  %v1459_v59 = vmul.f32 1.442695, %v1444_v53 }
 0x565   : > { %v1661_v45 = vpop.permute.xlu0 %1660 }
 0x566   : > { %v1457_v27 = vmul.f32 1.442695, %v1443_v22 }
 0x567   : > { %v2880_v18 = vpop.eup %2879  ;;  %v1659_v17 = vpop.permute.xlu1 %1658 }
 0x568   : > { %v1464_v5 = vsel %vm592_vm2, %v2880_v18, 0.0  ;;  %2891 = vpow2.f32 %v1457_v27 }
 0x569   : > { %v2882_v50 = vpop.eup %2881  ;;  %1465 = vadd.xlane.f32.xlu0 %v1464_v5  ;;  %2893 = vpow2.f32 %v1459_v59 }
 0x56a   : > { %v1461_v55 = vsel %vm592_vm2, %v2882_v50, 0.0 }
 0x56b   : > { %v3800_v13 = vpop.eup %2883  ;;  %1462 = vadd.xlane.f32.xlu1 %v1461_v55 }
 0x56c   : > { %v1470_v14 = vsel %vm592_vm2, %v3800_v13, 0.0 }
 0x56d   : > { %v2886_v15 = vpop.eup %2885 }
 0x56e   : > { %v1467_v12 = vsel %vm592_vm2, %v2886_v15, 0.0 }
 0x56f   : > { %v3805_v8 = vpop.eup %2887  ;;  %1471 = vadd.xlane.f32.xlu1 %v1470_v14  ;;  %1468 = vadd.xlane.f32.xlu0 %v1467_v12 }
 0x570   : > { %v1476_v38 = vsel %vm592_vm2, %v3805_v8, 0.0 }
 0x571   : > { %v2890_v52 = vpop.eup %2889 }
 0x572   : > { %v1473_v24 = vsel %vm592_vm2, %v2890_v52, 0.0 }
 0x573   : > { %1477 = vadd.xlane.f32.xlu0 %v1476_v38 }
 0x575   : > { %v3816_v16 = vpop.eup %2891 }
 0x576   : > { %v1479_v19 = vsel %vm592_vm2, %v3816_v16, 0.0  ;;  %v3820_v56 = vpop.eup %2893 }
 0x577   : > { %1474 = vadd.xlane.f32.xlu0 %v1473_v24  ;;  %v1482_v11 = vsel %vm592_vm2, %v3820_v56, 0.0 }
 0x580   : > { %1654 = vrot.lane.b32.xlu1 %v3341_v23, %s3129_s8 }
 0x58d   : > { %1656 = vrot.lane.b32.xlu0 %v3375_v43, %s3129_s8  ;;  %s2088_s8 = scalar_lea.sflag [#allocation4], %s3300_s6 }
 0x5a4   : > { %1480 = vadd.xlane.f32.xlu1 %v1479_v19 }
 0x5ac   : > { %1483 = vadd.xlane.f32.xlu0 %v1482_v11 }
 0x5b5   : > { %1640 = vrot.lane.b32.xlu1 %v3375_v43, %s3130_s15 }
 0x5b9   : > { %1644 = vrot.lane.b32.xlu1 %v3377_v44, %s3130_s15 }
 0x5bd   : > { %1648 = vrot.lane.b32.xlu1 %v3355_v34, %s3130_s15 }
 0x5c1   : > { %1652 = vrot.lane.b32.xlu1 %v3367_v41, %s3130_s15 }
 0x5c2   : > { %1638 = vrot.lane.b32.xlu0 %v3341_v23, %s3130_s15 }
 0x5c6   : > { %1642 = vrot.lane.b32.xlu0 %v3365_v40, %s3130_s15 }
 0x5ca   : > { %1646 = vrot.lane.b32.xlu0 %v3360_v37, %s3130_s15 }
 0x5ce   : > { %1650 = vrot.lane.b32.xlu0 %v3371_v42, %s3130_s15  ;;  %s2997_s15 = scalar_lea.vmem %s4001_s19, 1024 }
 0x5cf   : > { %p2998_p2 = scmp.ne.s32.totalorder %s4001_s19, %s2997_s15  ;;  %p3005_p13 = scmp.lt.s32.totalorder %s3003_s11, %s2997_s15 }
 0x5d1   : > { %p2999_p7 = pnand %p2998_p2, %p4116_p1  ;;  %p3006_p3 = por %p3005_p13, %p3004_p12 }
 0x5d3   : > { %p3000_p11 = pneg %p2999_p7 }
 0x5d5   : > { %p3007_p0 = pnand %p3006_p3, %p3000_p11 }
 0x5f2   : > { %v1466_v61 = vpop.xlane.xlu0 %1465 }
 0x5f3   : > { %2895 = vrcp.f32 %v1466_v61 }
 0x5f4   : > { %v1463_v60 = vpop.xlane.xlu1 %1462 }
 0x5f5   : > { %2897 = vrcp.f32 %v1463_v60 }
 0x5f8   : > { %v1469_v43 = vpop.xlane.xlu0 %1468  ;;  %v1472_v44 = vpop.xlane.xlu1 %1471 }
 0x5f9   : > { %2899 = vrcp.f32 %v1469_v43 }
 0x5fa   : > { %2901 = vrcp.f32 %v1472_v44 }
 0x5fc   : > { %v1478_v34 = vpop.xlane.xlu0 %1477 }
 0x5fd   : > { %2903 = vrcp.f32 %v1478_v34 }
 0x600   : > { %v1475_v41 = vpop.xlane.xlu0 %1474  ;;  %v2896_v23 = vpop.eup %2895 }
 0x601   : > { %2905 = vrcp.f32 %v1475_v41  ;;  %v1494_v37 = vmul.f32 %v2896_v23, %v2880_v18 }
 0x602   : > { %v2898_v40 = vpop.eup %2897 }
 0x603   : > { %v1493_v2 = vmul.f32 %v2898_v40, %v2882_v50 }
 0x605   : > { %2625 = vmatprep.mubr.msk.f32.mxu0 %vm592_vm2, %v1493_v2 }
 0x606   : > { %v2900_v42 = vpop.eup %2899  ;;  %2626 = vmatmul.mubr.msk.f32.vlgmr.msra.gmra.mxu0 %vm592_vm2, %v1494_v37 }
 0x607   : > { %v2902_v54 = vpop.eup %2901  ;;  %2638 = vmatpush3.xpose.msk.msra.mxu0 %vm454_vm1, %v3776_v28  ;;  %v1495_v4 = vmul.f32 %v2900_v42, %v2886_v15 }
 0x608   : > { %2639 = vmatprep.subr.msk.mxu0 %vm454_vm1, %v3790_v39  ;;  %v1496_v7 = vmul.f32 %v2902_v54, %v3800_v13 }
 0x609   : > { %2628 = vmatprep.mubr.msk.f32.mxu0 %vm592_vm2, %v1495_v4 }
 0x60a   : > { %2629 = vmatmul.mubr.msk.f32.gmra.mxu0 %vm592_vm2, %v1496_v7  ;;  %v2904_v57 = vpop.eup %2903 }
 0x60b   : > { %2640 = vmatpush3.xpose.msk.msra.mxu0 %vm454_vm1, %v3790_v39  ;;  %v1498_v1 = vmul.f32 %v2904_v57, %v3805_v8  ;;  %v1655_v39 = vpop.permute.xlu1 %1654 }
 0x60c   : > { %2641 = vmatprep.subr.msk.mxu0 %vm454_vm1, %v3781_v26 }
 0x60e   : > { %v2906_v6 = vpop.eup %2905 }
 0x60f   : > { %2642 = vmatpush3.xpose.msk.msra.mxu0 %vm454_vm1, %v3781_v26  ;;  %v1497_v28 = vmul.f32 %v2906_v6, %v2890_v52  ;;  %v1657_v26 = vpop.permute.xlu0 %1656  ;;  %v2571_v52 = vpop.f32.mrf.mxu0 }
 0x610   : > { %2643 = vmatprep.subr.msk.mxu0 %vm454_vm1, %v3783_v51 }
 0x611   : > { %2631 = vmatprep.mubr.msk.f32.mxu0 %vm592_vm2, %v1497_v28  ;;  %v1205_v24 = vpop.f32.mrf.mxu0 }
 0x612   : > { %2632 = vmatmul.mubr.msk.f32.gmra.mxu0 %vm592_vm2, %v1498_v1 }
 0x613   : > { %2644 = vmatpush3.xpose.msk.msra.mxu0 %vm454_vm1, %v3783_v51  ;;  %v2574_v47 = vpop.f32.mrf.mxu0 }
 0x614   : > { %2645 = vmatprep.subr.msk.mxu0 %vm454_vm1, %v1661_v45 }
 0x615   : > { %v1215_v22 = vpop.f32.mrf.mxu0 }
 0x616   : > { %v1216_v43 = vadd.f32 %v1215_v22, %v3675_v33 }
 0x617   : > { %2646 = vmatpush3.xpose.msk.msra.mxu0 %vm454_vm1, %v1661_v45  ;;  %v2577_v27 = vpop.f32.mrf.mxu0 }
 0x618   : > { %2647 = vmatprep.subr.msk.mxu0 %vm454_vm1, %v1659_v17 }
 0x619   : > { %v3874_v36 = vpop.f32.mrf.mxu0 }
 0x61b   : > { %2648 = vmatpush3.xpose.msk.msra.mxu0 %vm454_vm1, %v1659_v17  ;;  %v2580_v53 = vpop.f32.mrf.mxu0  ;;  %v1221_v17 = vadd.f32 %v2574_v47, %v3673_v62 }
 0x61c   : > { %2649 = vmatprep.subr.msk.mxu0 %vm454_vm1, %v1657_v26  ;;  %v1241_v2 = vadd.f32 %v2580_v53, %v3681_v58 }
 0x61d   : > { %v3876_v59 = vpop.f32.mrf.mxu0 }
 0x61f   : > { %2650 = vmatpush3.xpose.msk.msra.mxu0 %vm454_vm1, %v1657_v26 }
 0x620   : > { %2651 = vmatprep.subr.msk.mxu0 %vm454_vm1, %v1655_v39 }
 0x623   : > { %2652 = vmatpush3.xpose.msk.msra.mxu0 %vm454_vm1, %v1655_v39 }
 0x62d   : > { %v1481_v9 = vpop.xlane.xlu1 %1480 }
 0x62e   : > { %2907 = vrcp.f32 %v1481_v9 }
 0x631   : > { %v1641_v50 = vpop.permute.xlu1 %1640 }
 0x635   : > { %v1484_v51 = vpop.xlane.xlu0 %1483  ;;  %v1645_v15 = vpop.permute.xlu1 %1644 }
 0x636   : > { %2909 = vrcp.f32 %v1484_v51 }
 0x639   : > { %v1639_v18 = vpop.permute.xlu0 %1638  ;;  %v1649_v12 = vpop.permute.xlu1 %1648 }
 0x63b   : > { %v2908_v3 = vpop.eup %2907 }
 0x63c   : > { %v1499_v46 = vmul.f32 %v2908_v3, %v3816_v16  ;;  %v1211_v16 = vadd.f32 %v2571_v52, %v3669_v25  ;;  %v1231_v25 = vadd.f32 %v2577_v27, %v3677_v29 }
 0x63d   : > { %v1643_v13 = vpop.permute.xlu0 %1642  ;;  %v1653_v38 = vpop.permute.xlu1 %1652 }
 0x63e   : > { %2634 = vmatprep.mubr.msk.f32.mxu0 %vm592_vm2, %v1499_v46 }
 0x641   : > { %v1647_v14 = vpop.permute.xlu0 %1646 }
 0x643   : > { %v2910_v5 = vpop.eup %2909 }
 0x644   : > { %v1500_v55 = vmul.f32 %v2910_v5, %v3820_v56  ;;  %v1206_v56 = vadd.f32 %v1205_v24, %v3671_v21 }
 0x645   : > { %v1651_v8 = vpop.permute.xlu0 %1650 }
 0x646   : > { %2635 = vmatmul.mubr.msk.f32.gmra.mxu0 %vm592_vm2, %v1500_v55 }
 0x647   : > { %2653 = vmatprep.mubr.msk.f32.mxu0 %vm454_vm1, %v1639_v18 }
 0x64a   : > { %2654 = vmatmul.mubr.msk.f32.vlgmr.msra.gmra.mxu0 %vm454_vm1, %v1641_v50 }
 0x64b   : > { %2656 = vmatprep.mubr.msk.f32.mxu0 %vm454_vm1, %v1643_v13 }
 0x64e   : > { %2657 = vmatmul.mubr.msk.f32.gmra.mxu0 %vm454_vm1, %v1645_v15 }
 0x64f   : > { %2659 = vmatprep.mubr.msk.f32.mxu0 %vm454_vm1, %v1647_v14 }
 0x652   : > { %2660 = vmatmul.mubr.msk.f32.gmra.mxu0 %vm454_vm1, %v1649_v12 }
 0x653   : > { %2662 = vmatprep.mubr.msk.f32.mxu0 %vm454_vm1, %v1651_v8 }
 0x656   : > { %2663 = vmatmul.mubr.msk.f32.gmra.mxu0 %vm454_vm1, %v1653_v38 }
 0x6c6   : > { %v2627_v19 = vpop.f32.mrf.mxu0 }
 0x6c7   : > { %v3880_v11 = vadd.f32 %v2627_v19, %v1211_v16 }
 0x6c8   : > { %v1591_v45 = vpop.f32.mrf.mxu0 }
 0x6c9   : > { %v3883_v61 = vadd.f32 %v1591_v45, %v1206_v56 }
 0x6ca   : > { %v2630_v60 = vpop.f32.mrf.mxu0 }
 0x6cb   : > { %v3886_v44 = vadd.f32 %v2630_v60, %v1221_v17 }
 0x6cc   : > { %v1601_v34 = vpop.f32.mrf.mxu0 }
 0x6cd   : > { %v3888_v41 = vadd.f32 %v1601_v34, %v1216_v43 }
 0x6d2   : > { %v2633_v23 = vpop.f32.mrf.mxu0 }
 0x6d3   : > { %v3891_v40 = vadd.f32 %v2633_v23, %v1231_v25 }
 0x6d4   : > { %v3893_v21 = vpop.f32.mrf.mxu0 }
 0x706   : > { %v2636_v62 = vpop.f32.mrf.mxu0 }
 0x707   : > { %v3896_v37 = vadd.f32 %v2636_v62, %v1241_v2 }
 0x708   : > { %v3898_v42 = vpop.f32.mrf.mxu0 }
 0x70a   : > { %v2655_v33 = vpop.f32.mrf.mxu0 }
 0x70b   : > { %v1810_v54 = vsel %vm592_vm2, %v2655_v33, -inf }
 0x70c   : > { %1811 = vmax.xlane.f32.xlu1 %v1810_v54  ;;  %v1768_v4 = vpop.f32.mrf.mxu0 }
 0x70d   : > { %v1807_v7 = vsel %vm592_vm2, %v1768_v4, -inf }
 0x70e   : > { %1808 = vmax.xlane.f32.xlu0 %v1807_v7  ;;  %v2658_v29 = vpop.f32.mrf.mxu0 }
 0x70f   : > { %v1816_v1 = vsel %vm592_vm2, %v2658_v29, -inf }
 0x710   : > { %v1778_v57 = vpop.f32.mrf.mxu0 }
 0x711   : > { %v1813_v6 = vsel %vm592_vm2, %v1778_v57, -inf }
 0x712   : > { %1814 = vmax.xlane.f32.xlu0 %v1813_v6  ;;  %v2661_v28 = vpop.f32.mrf.mxu0 }
 0x713   : > { %v1822_v39 = vsel %vm592_vm2, %v2661_v28, -inf }
 0x714   : > { %v1788_v58 = vpop.f32.mrf.mxu0 }
 0x715   : > { %v1819_v26 = vsel %vm592_vm2, %v1788_v58, -inf }
 0x716   : > { %1817 = vmax.xlane.f32.xlu0 %v1816_v1  ;;  %1820 = vmax.xlane.f32.xlu1 %v1819_v26  ;;  %v2664_v9 = vpop.f32.mrf.mxu0 }
 0x717   : > { %v1828_v51 = vsel %vm592_vm2, %v2664_v9, -inf }
 0x718   : > { %v3915_v3 = vpop.f32.mrf.mxu0 }
 0x719   : > { %v1825_v46 = vsel %vm592_vm2, %v3915_v3, -inf }
 0x71a   : > { %1823 = vmax.xlane.f32.xlu0 %v1822_v39 }
 0x71e   : > { %1829 = vmax.xlane.f32.xlu0 %v1828_v51 }
 0x727   : > { %1917 = vrot.lane.b32.xlu1 %v3728_v10, %s3124_s28 }
 0x72b   : > { %1913 = vrot.lane.b32.xlu1 %v3740_v20, %s3124_s28 }
 0x734   : > { %1915 = vrot.lane.b32.xlu0 %v3733_v48, %s3124_s28 }
 0x738   : > { %1909 = vrot.lane.b32.xlu0 %v3754_v35, %s3124_s28 }
 0x74f   : > { %1826 = vmax.xlane.f32.xlu1 %v1825_v46 }
 0x760   : > { %1911 = vrot.lane.b32.xlu1 %v3747_v49, %s3124_s28 }
 0x764   : > { %1907 = vrot.lane.b32.xlu1 %v3760_v32, %s3124_s28 }
 0x795   : > { %v1812_v10 = vpop.xlane.xlu1 %1811 }
 0x796   : > { %v1832_v20 = vsub.f32 %v2655_v33, %v1812_v10 }
 0x797   : > { %v1809_v18 = vpop.xlane.xlu0 %1808 }
 0x798   : > { %v1841_v5 = vmul.f32 1.442695, %v1832_v20  ;;  %v1831_v48 = vsub.f32 %v1768_v4, %v1809_v18 }
 0x79a   : > { %2911 = vpow2.f32 %v1841_v5  ;;  %v1839_v50 = vmul.f32 1.442695, %v1831_v48 }
 0x79b   : > { %v1815_v35 = vpop.xlane.xlu0 %1814 }
 0x79c   : > { %2913 = vpow2.f32 %v1839_v50  ;;  %v1833_v55 = vsub.f32 %v1778_v57, %v1815_v35 }
 0x79e   : > { %v1843_v13 = vmul.f32 1.442695, %v1833_v55 }
 0x79f   : > { %v1818_v15 = vpop.xlane.xlu0 %1817  ;;  %v1821_v14 = vpop.xlane.xlu1 %1820 }
 0x7a0   : > { %2915 = vpow2.f32 %v1843_v13  ;;  %v1834_v12 = vsub.f32 %v2658_v29, %v1818_v15  ;;  %v1835_v8 = vsub.f32 %v1788_v58, %v1821_v14 }
 0x7a2   : > { %v1845_v49 = vmul.f32 1.442695, %v1834_v12  ;;  %v1847_v38 = vmul.f32 1.442695, %v1835_v8 }
 0x7a3   : > { %v1824_v52 = vpop.xlane.xlu0 %1823  ;;  %v1918_v32 = vpop.permute.xlu1 %1917 }
 0x7a4   : > { %2917 = vpow2.f32 %v1845_v49  ;;  %v1836_v24 = vsub.f32 %v2661_v28, %v1824_v52  ;;  %2665 = vmatprep.subr.mxu1 %v1918_v32 }
 0x7a5   : > { %2919 = vpow2.f32 %v1847_v38  ;;  %2666 = vmatpush3.msra.mxu1 %v1918_v32 }
 0x7a6   : > { %v1849_v47 = vmul.f32 1.442695, %v1836_v24 }
 0x7a7   : > { %v3923_v22 = vpop.eup %2911  ;;  %v1830_v27 = vpop.xlane.xlu0 %1829 }
 0x7a8   : > { %2921 = vpow2.f32 %v1849_v47  ;;  %v1838_v53 = vsub.f32 %v2664_v9, %v1830_v27  ;;  %v1858_v16 = vsel %vm592_vm2, %v3923_v22, 0.0  ;;  %v1914_v43 = vpop.permute.xlu1 %1913 }
 0x7a9   : > { %v2914_v19 = vpop.eup %2913  ;;  %1859 = vadd.xlane.f32.xlu0 %v1858_v16 }
 0x7aa   : > { %v1853_v56 = vmul.f32 1.442695, %v1838_v53  ;;  %v1855_v45 = vsel %vm592_vm2, %v2914_v19, 0.0  ;;  %v2331_v53 = vld [vmem:[%s4111_s4] ss:$0 sm:$0xff] }
 0x7ab   : > { %v1916_v17 = vpop.permute.xlu0 %1915  ;;  %1856 = vadd.xlane.f32.xlu1 %v1855_v45 }
 0x7ac   : > { %2923 = vpow2.f32 %v1853_v56  ;;  %2667 = vmatprep.subr.mxu1 %v1916_v17 }
 0x7ad   : > { %v3928_v60 = vpop.eup %2915  ;;  %2668 = vmatpush3.msra.mxu1 %v1916_v17 }
 0x7ae   : > { %2669 = vmatprep.subr.mxu1 %v1914_v43  ;;  %v1861_v34 = vsel %vm592_vm2, %v3928_v60, 0.0 }
 0x7af   : > { %1862 = vadd.xlane.f32.xlu1 %v1861_v34  ;;  %2670 = vmatpush3.msra.mxu1 %v1914_v43  ;;  %v1910_v58 = vpop.permute.xlu0 %1909  ;;  %v1226_v34 = vadd.f32 %v3874_v36, %v3679_v63  ;;  %v1236_v63 = vadd.f32 %v3876_v59, %v3683_v0 }
 0x7b1   : > { %v3932_v25 = vpop.eup %2917 }
 0x7b2   : > { %v3934_v23 = vpop.eup %2919  ;;  %v1864_v2 = vsel %vm592_vm2, %v3932_v25, 0.0 }
 0x7b3   : > { %1865 = vadd.xlane.f32.xlu0 %v1864_v2  ;;  %v1867_v62 = vsel %vm592_vm2, %v3934_v23, 0.0  ;;  %v1634_v2 = vadd.f32 %v3893_v21, %v1226_v34 }
 0x7b4   : > { %1868 = vadd.xlane.f32.xlu1 %v1867_v62 }
 0x7b5   : > { %v3940_v33 = vpop.eup %2921 }
 0x7b6   : > { %v1870_v54 = vsel %vm592_vm2, %v3940_v33, 0.0 }
 0x7b7   : > { %1871 = vadd.xlane.f32.xlu0 %v1870_v54  ;;  %v1636_v54 = vadd.f32 %v3898_v42, %v1236_v63 }
 0x7b9   : > { %v3944_v4 = vpop.eup %2923 }
 0x7ba   : > { %v1876_v7 = vsel %vm592_vm2, %v3944_v4, 0.0 }
 0x7bb   : > { %1877 = vadd.xlane.f32.xlu0 %v1876_v7 }
 0x7d1   : > { %1905 = vrot.lane.b32.xlu0 %v3766_v31, %s3124_s28 }
 0x7d8   : > { %v1827_v29 = vpop.xlane.xlu1 %1826 }
 0x7d9   : > { %v1837_v57 = vsub.f32 %v3915_v3, %v1827_v29 }
 0x7db   : > { %v1851_v6 = vmul.f32 1.442695, %v1837_v57 }
 0x7dc   : > { %v1912_v28 = vpop.permute.xlu1 %1911 }
 0x7dd   : > { %2925 = vpow2.f32 %v1851_v6  ;;  %2671 = vmatprep.subr.mxu1 %v1912_v28 }
 0x7de   : > { %2672 = vmatpush3.msra.mxu1 %v1912_v28 }
 0x7df   : > { %2673 = vmatprep.subr.mxu1 %v1910_v58 }
 0x7e0   : > { %2674 = vmatpush3.msra.mxu1 %v1910_v58  ;;  %v1908_v1 = vpop.permute.xlu1 %1907 }
 0x7e1   : > { %2675 = vmatprep.subr.mxu1 %v1908_v1 }
 0x7e2   : > { %2676 = vmatpush3.msra.mxu1 %v1908_v1 }
 0x7ea   : > { %v2926_v26 = vpop.eup %2925 }
 0x7eb   : > { %v1873_v39 = vsel %vm592_vm2, %v2926_v26, 0.0 }
 0x7ec   : > { %1874 = vadd.xlane.f32.xlu1 %v1873_v39 }
 0x7fd   : > { %1903 = vrot.lane.b32.xlu1 %v3771_v30, %s3124_s28  ;;  %s2336_s28 = sshll.u32 %s2102_s3, 7 }
 0x7fe   : > { %s4008_s14 = scalar_lea.hbm %s4115_s25, %s2336_s28 }
 0x832   : > { %v1860_v9 = vpop.xlane.xlu0 %1859 }
 0x834   : > { %v1857_v31 = vpop.xlane.xlu1 %1856 }
 0x835   : > { %2927 = vrcp.f32 %v1857_v31 }
 0x836   : > { %2929 = vrcp.f32 %v1860_v9 }
 0x838   : > { %v1863_v5 = vpop.xlane.xlu1 %1862 }
 0x839   : > { %2931 = vrcp.f32 %v1863_v5 }
 0x83c   : > { %v1866_v51 = vpop.xlane.xlu0 %1865 }
 0x83d   : > { %v1869_v48 = vpop.xlane.xlu1 %1868  ;;  %2933 = vrcp.f32 %v1866_v51 }
 0x83e   : > { %2935 = vrcp.f32 %v1869_v48 }
 0x840   : > { %v1872_v3 = vpop.xlane.xlu0 %1871 }
 0x841   : > { %2937 = vrcp.f32 %v1872_v3 }
 0x842   : > { %v2928_v46 = vpop.eup %2927 }
 0x843   : > { %v1887_v10 = vmul.f32 %v2928_v46, %v2914_v19  ;;  %v2930_v50 = vpop.eup %2929 }
 0x844   : > { %v1878_v20 = vpop.xlane.xlu0 %1877  ;;  %v1888_v13 = vmul.f32 %v2930_v50, %v3923_v22 }
 0x845   : > { %2681 = vmatprep.mubr.msk.f32.mxu1 %vm592_vm2, %v1887_v10  ;;  %2939 = vrcp.f32 %v1878_v20 }
 0x846   : > { %v2932_v35 = vpop.eup %2931 }
 0x847   : > { %v1889_v14 = vmul.f32 %v2932_v35, %v3928_v60 }
 0x848   : > { %v1906_v18 = vpop.permute.xlu0 %1905 }
 0x849   : > { %2677 = vmatprep.subr.mxu1 %v1906_v18 }
 0x84a   : > { %2678 = vmatpush3.msra.mxu1 %v1906_v18  ;;  %v2934_v15 = vpop.eup %2933 }
 0x84b   : > { %v2936_v12 = vpop.eup %2935  ;;  %v1890_v8 = vmul.f32 %v2934_v15, %v3932_v25 }
 0x84c   : > { %v1891_v38 = vmul.f32 %v2936_v12, %v3934_v23 }
 0x84e   : > { %v2938_v49 = vpop.eup %2937 }
 0x84f   : > { %v1892_v32 = vmul.f32 %v2938_v49, %v3940_v33 }
 0x852   : > { %v2940_v52 = vpop.eup %2939 }
 0x853   : > { %v1894_v22 = vmul.f32 %v2940_v52, %v3944_v4 }
 0x875   : > { %v1875_v30 = vpop.xlane.xlu1 %1874 }
 0x876   : > { %2941 = vrcp.f32 %v1875_v30 }
 0x879   : > { %v1904_v55 = vpop.permute.xlu1 %1903 }
 0x87a   : > { %2679 = vmatprep.subr.mxu1 %v1904_v55 }
 0x87b   : > { %2680 = vmatpush3.msra.mxu1 %v1904_v55 }
 0x87c   : > { %2682 = vmatmul.mubr.msk.f32.vlgmr.msra.gmra.mxu1 %vm592_vm2, %v1888_v13 }
 0x87d   : > { %2684 = vmatprep.mubr.msk.f32.mxu1 %vm592_vm2, %v1889_v14 }
 0x880   : > { %2685 = vmatmul.mubr.msk.f32.gmra.mxu1 %vm592_vm2, %v1890_v8 }
 0x881   : > { %2687 = vmatprep.mubr.msk.f32.mxu1 %vm592_vm2, %v1891_v38 }
 0x883   : > { %v2942_v24 = vpop.eup %2941 }
 0x884   : > { %2688 = vmatmul.mubr.msk.f32.gmra.mxu1 %vm592_vm2, %v1892_v32  ;;  %v1893_v47 = vmul.f32 %v2942_v24, %v2926_v26 }
 0x886   : > { %2690 = vmatprep.mubr.msk.f32.mxu1 %vm592_vm2, %v1893_v47 }
 0x888   : > { %2691 = vmatmul.mubr.msk.f32.gmra.mxu1 %vm592_vm2, %v1894_v22 }
 0x93c   : > { %v2683_v27 = vpop.f32.mrf.mxu1 }
 0x93d   : > { %v2057_v16 = vadd.f32 %v2683_v27, %v3880_v11 }
 0x93e   : > { %v2017_v19 = vpop.f32.mrf.mxu1 }
 0x93f   : > { %v2072_v56 = vadd.f32 %v2331_v53, %v2057_v16  ;;  %v2056_v45 = vadd.f32 %v2017_v19, %v3883_v61 }
 0x940   : > { %v2686_v17 = vpop.f32.mrf.mxu1 }
 0x941   : > { %2080 = vst.msk [vmem:[%s3976_s13 + $0x8] sm:$0xff] %vm292_vm0, %v2072_v56  ;;  %v2071_v60 = vadd.f32 %v2331_v53, %v2056_v45  ;;  %v2059_v43 = vadd.f32 %v2686_v17, %v3886_v44 }
 0x942   : > { %v2027_v11 = vpop.f32.mrf.mxu1 }
 0x943   : > { %2079 = vst.msk [vmem:[%s3976_s13] sm:$0xff] %vm292_vm0, %v2071_v60  ;;  %v2074_v61 = vadd.f32 %v2331_v53, %v2059_v43  ;;  %v2058_v25 = vadd.f32 %v2027_v11, %v3888_v41 }
 0x944   : > { %v2689_v23 = vpop.f32.mrf.mxu1 }
 0x945   : > { %2082 = vst.msk [vmem:[%s3976_s13 + $0x18] sm:$0xff] %vm292_vm0, %v2074_v61  ;;  %v2073_v44 = vadd.f32 %v2331_v53, %v2058_v25  ;;  %v2061_v62 = vadd.f32 %v2689_v23, %v3891_v40 }
 0x946   : > { %v2037_v33 = vpop.f32.mrf.mxu1 }
 0x947   : > { %2081 = vst.msk [vmem:[%s3976_s13 + $0x10] sm:$0xff] %vm292_vm0, %v2073_v44  ;;  %v2076_v36 = vadd.f32 %v2331_v53, %v2061_v62  ;;  %v2060_v41 = vadd.f32 %v2037_v33, %v1634_v2 }
 0x948   : > { %v2692_v21 = vpop.f32.mrf.mxu1 }
 0x949   : > { %2084 = vst.msk [vmem:[%s3976_s13 + $0x28] sm:$0xff] %vm292_vm0, %v2076_v36  ;;  %v2075_v40 = vadd.f32 %v2331_v53, %v2060_v41  ;;  %v2063_v4 = vadd.f32 %v2692_v21, %v3896_v37 }
 0x94a   : > { %v2047_v7 = vpop.f32.mrf.mxu1 }
 0x94b   : > { %2083 = vst.msk [vmem:[%s3976_s13 + $0x20] sm:$0xff] %vm292_vm0, %v2075_v40  ;;  %v2078_v0 = vadd.f32 %v2331_v53, %v2063_v4  ;;  %v2062_v59 = vadd.f32 %v2047_v7, %v1636_v54 }
 0x94d   : > { %2086 = vst.msk [vmem:[%s3976_s13 + $0x38] sm:$0xff] %vm292_vm0, %v2078_v0  ;;  %v2077_v42 = vadd.f32 %v2331_v53, %v2062_v59 }
 0x94f   : > { %2085 = vst.msk [vmem:[%s3976_s13 + $0x30] sm:$0xff] %vm292_vm0, %v2077_v42 }
 0x950   : > { %3010 = shalt.err (!%p3007_p0)
}
 0x951   : > { %s3011_s4 = scalar_lea.hbm %s4008_s14, 1024  ;;  %s3015_s12 = scalar_lea.hbm %s4115_s25, 8192 }
 0x952   : > { %p3012_p4 = scmp.ne.s32.totalorder %s4008_s14, %s3011_s4  ;;  %p3016_p10 = scmp.lt.s32.totalorder %s4008_s14, %s4115_s25 }
 0x953   : > { %p3017_p6 = scmp.lt.s32.totalorder %s3015_s12, %s3011_s4 }
 0x954   : > { %p3013_p5 = pnand %p3012_p4, %p4116_p1 }
 0x955   : > { %p3018_p8 = por %p3017_p6, %p3016_p10 }
 0x956   : > { %p3014_p9 = pneg %p3013_p5 }
 0x958   : > { %p3019_p2 = pnand %p3018_p8, %p3014_p9 }
 0x95a   : > { %3022 = shalt.err (!%p3019_p2)
}
 0x95b   : > { %s3132_s1 = smov 128   ;;  %s3133_s3 = smov 256  }
 0x95c   : > { %s3134_s28 = smov 8  }
 0x95d   : > { %2699 = dma.vmem_to_hbm [thread:$0]  (%p4116_p1), %s4001_s19, 1024, %s4008_s14, %s2088_s8, %s3132_s1, %s3133_s3, %s3134_s28  }
 0x95e PF: > { %s4117_s5 = sld [smem:[#allocation15_spill]] }
 0x95f   : > { %s4118_s9 = sld [smem:[#allocation11_spill]] }
 0x960   : > { %s4119_s15 = sld [smem:[#allocation17_spill]] }
 0x964   : > { %p2716_p7 = scmp.ge.s32.totalorder %s4117_s5, 2 }
 0x965   : > { %s2120_s24 = sand.u32 1, %s4118_s9  }
 0x966   : > { %p4120_p11 = scmp.ne.s32.totalorder %s4119_s15, 0  ;;  %s2121_s30 = scalar_lea.sflag [#allocation4], %s2120_s24 }
 0x968   : > { %p2710_p12 = pnand %p2716_p7, %p4120_p11 }
 0x96a   : > { %p2711_p13 = pneg %p2710_p12 }
 0x96c   : > { %3072 = dma.done.wait (%p2711_p13), %s2121_s30, 1024  }
 0x96d   : > { %3074 = vsyncadd (%p2711_p13), %s2121_s30, 4294966272  ;;  %s21_s24 = sadd.s32 1, %s4117_s5   ;;  %s4121_s6 = sld [smem:[#allocation18_spill]] }
 0x96e   : > { %p18_p3 = scmp.ge.s32.totalorder %s21_s24, 10   ;;  %s4122_s15 = smov %s3081_s16 }
 0x96f   : > { %s4123_s16 = smov %s3085_s17  ;;  %s4124_s17 = smov %s3295_s29 }
 0x970   : > { %s4125_s18 = smov %s3101_s21  ;;  %s4126_s19 = smov %s3105_s22 }
 0x971   : > { %s4127_s20 = smov %s3109_s23  ;;  %s4129_s22 = smov %s4136_s26 }
 0x972   : > { %s4130_s23 = smov %s4140_s10  ;;  %20 = sbr.rel (!%p18_p3) target bundleno = 13 (0xd), region = 85 }
 0x973   : > { %s4128_s21 = smov %s4121_s6 }
 0x977   :  { %2126 = vsyncpa [#allocation3], 1 }
 0x978   :  { %2128 = vsyncpa [#allocation3 + $0x1], 1 }
 0x979   :  { %2129 = vsyncpa [#allocation6], 1 }
 0x97a   :  { %2130 = vsyncpa [#allocation4], 1 }
 0x97b   :  { %2132 = vsyncpa [#allocation4 + $0x1], 1 }

</bundles_post_ra>
